<compile_context>
chip_gen: v7x
topology: tpu7x:2x2x1
jax: 0.10.0
libtpu: 0.0.40
codegen_flags: <defaults>
</compile_context>

<pallas_src>
import jax
import jax.numpy as jnp
import numpy as np
from jax.experimental import pallas as pl
from jax.experimental.pallas import tpu as pltpu

EPS = 1e-5
LANE = 128
DEFAULT_TM = 1024                   # row tile over M = N*H*W (review: 256 -> 1024)
VMEM_LIMIT = 48 * 1024 * 1024       # < v7x 64 MiB physical, > default 32 MiB scoped limit


def _round_up(x, m):
    return (x + m - 1) // m * m


def _cparams(n_axes):
    return pltpu.CompilerParams(
        dimension_semantics=("parallel",) * n_axes,
        vmem_limit_bytes=VMEM_LIMIT,
    )


# ---------------------------------------------------------------------------
# Pallas kernels
# ---------------------------------------------------------------------------
def _mm_stats_kernel(x_ref, w_ref, z_ref, stat_ref):
    """1x1 conv tile: z = x @ w (bf16 MXU operands, f32 accumulation).
    z is stored bf16; BN partials (sum, sum-of-squares) come from the exact f32 acc."""
    z = jnp.dot(x_ref[...], w_ref[...], preferred_element_type=jnp.float32)
    z_ref[...] = z.astype(z_ref.dtype)
    s = jnp.sum(z, axis=0, keepdims=True)
    sq = jnp.sum(z * z, axis=0, keepdims=True)
    stat_ref[0] = jnp.concatenate([s, sq], axis=0)          # (2, Cp)


def _conv3x3_fused_kernel(ctr_ref, top_ref, bot_ref, scale_ref, shift_ref,
                          w_ref, z_ref, stat_ref, acc_ref):
    """3x3 / stride-1 / pad-1 conv on one (image, row-block) tile.

    Fuses the preceding 1x1 stage's BN affine + ReLU onto the loaded bf16 rows
    (no HBM round-trip of the normalized activation, no HBM spatial pad).
    1-row halo comes from two single-row refs; halo rows outside the image are
    zeroed AFTER the affine. 9 taps accumulate into a VMEM f32 scratch."""
    i = pl.program_id(1)
    n_blk = pl.num_programs(1)
    th, W, C1p = ctr_ref.shape[1], ctr_ref.shape[2], ctr_ref.shape[3]

    sc = scale_ref[...].reshape(1, 1, C1p)
    sh = shift_ref[...].reshape(1, 1, C1p)

    def _affine_relu(v):                                     # (r, W, C1p) bf16 -> bf16
        t = v.astype(jnp.float32) * sc + sh
        return jnp.maximum(t, 0.0).astype(jnp.bfloat16)

    ctr = _affine_relu(ctr_ref[0])                           # (th, W, C1p)
    top = _affine_relu(top_ref[0])                           # (1, W, C1p)
    bot = _affine_relu(bot_ref[0])                           # (1, W, C1p)
    top = jnp.where(i == 0, jnp.zeros_like(top), top)        # halo above image -> 0
    bot = jnp.where(i == n_blk - 1, jnp.zeros_like(bot), bot)

    rows = jnp.concatenate([top, ctr, bot], axis=0)          # (th+2, W, C1p)
    zcol = jnp.zeros((th + 2, 1, C1p), jnp.bfloat16)
    xw = jnp.concatenate([zcol, rows, zcol], axis=1)         # (th+2, W+2, C1p)

    for dy in range(3):                                      # unrolled 9-tap loop
        slab = xw[dy:dy + th]                                # (th, W+2, C1p), leading-dim slice
        for dx in range(3):
            win = slab[:, dx:dx + W, :].reshape(th * W, C1p)
            part = jnp.dot(win, w_ref[dy * 3 + dx],
                           preferred_element_type=jnp.float32)
            if dy == 0 and dx == 0:
                acc_ref[...] = part
            else:
                acc_ref[...] += part

    acc = acc_ref[...]
    z_ref[0] = acc.astype(z_ref.dtype)                       # bf16 intermediate
    s = jnp.sum(acc, axis=0, keepdims=True)
    sq = jnp.sum(acc * acc, axis=0, keepdims=True)
    stat_ref[0, 0] = jnp.concatenate([s, sq], axis=0)        # (2, C2p)


def _bn_relu_kernel(z_ref, scale_ref, shift_ref, o_ref):
    """Second BN pass for the 3x3 stage: per-channel affine (batch stats + gamma/beta
    pre-folded) + ReLU, bf16 in / bf16 out."""
    y = z_ref[...].astype(jnp.float32) * scale_ref[...] + shift_ref[...]
    o_ref[...] = jnp.maximum(y, 0.0).astype(o_ref.dtype)


# ---------------------------------------------------------------------------
# pallas_call wrappers
# ---------------------------------------------------------------------------
def _matmul_stats_call(x2d, w2d, tm):
    Mp, K = x2d.shape
    Cp = w2d.shape[1]
    gm = Mp // tm
    return pl.pallas_call(
        _mm_stats_kernel,
        out_shape=(jax.ShapeDtypeStruct((Mp, Cp), jnp.bfloat16),
                   jax.ShapeDtypeStruct((gm, 2, Cp), jnp.float32)),
        grid=(gm,),
        in_specs=[pl.BlockSpec((tm, K), lambda i: (i, 0)),
                  pl.BlockSpec((K, Cp), lambda i: (0, 0))],
        out_specs=(pl.BlockSpec((tm, Cp), lambda i: (i, 0)),
                   pl.BlockSpec((1, 2, Cp), lambda i: (i, 0, 0))),
        compiler_params=_cparams(1),
    )(x2d, w2d)


def _conv3x3_fused_call(z1_4d, scale1, shift1, w9, th):
    N, H, W, C1p = z1_4d.shape
    C2p = w9.shape[2]
    nH = H // th
    return pl.pallas_call(
        _conv3x3_fused_kernel,
        out_shape=(jax.ShapeDtypeStruct((N, H * W, C2p), jnp.bfloat16),
                   jax.ShapeDtypeStruct((N, nH, 2, C2p), jnp.float32)),
        grid=(N, nH),
        in_specs=[
            # center rows of the block
            pl.BlockSpec((1, th, W, C1p), lambda n, i: (n, i, 0, 0)),
            # 1-row top / bottom halo (clamped index; zeroed in-kernel when outside image)
            pl.BlockSpec((1, 1, W, C1p),
                         lambda n, i: (n, jnp.maximum(i * th - 1, 0), 0, 0)),
            pl.BlockSpec((1, 1, W, C1p),
                         lambda n, i: (n, jnp.minimum(i * th + th, H - 1), 0, 0)),
            pl.BlockSpec((1, C1p), lambda n, i: (0, 0)),     # fused BN1 scale
            pl.BlockSpec((1, C1p), lambda n, i: (0, 0)),     # fused BN1 shift
            pl.BlockSpec((9, C1p, C2p), lambda n, i: (0, 0, 0)),
        ],
        out_specs=(pl.BlockSpec((1, th * W, C2p), lambda n, i: (n, i, 0)),
                   pl.BlockSpec((1, 1, 2, C2p), lambda n, i: (n, i, 0, 0))),
        scratch_shapes=[pltpu.VMEM((th * W, C2p), jnp.float32)],
        compiler_params=_cparams(2),
    )(z1_4d, z1_4d, z1_4d, scale1, shift1, w9)


def _bn_relu_call(z2d, scale, shift, tm):
    Mp, Cp = z2d.shape
    gm = Mp // tm
    return pl.pallas_call(
        _bn_relu_kernel,
        out_shape=jax.ShapeDtypeStruct((Mp, Cp), jnp.bfloat16),
        grid=(gm,),
        in_specs=[pl.BlockSpec((tm, Cp), lambda i: (i, 0)),
                  pl.BlockSpec((1, Cp), lambda i: (0, 0)),
                  pl.BlockSpec((1, Cp), lambda i: (0, 0))],
        out_specs=pl.BlockSpec((tm, Cp), lambda i: (i, 0)),
        compiler_params=_cparams(1),
    )(z2d, scale, shift)


# ---------------------------------------------------------------------------
# BN stats finalization (tiny JAX reduction over per-tile partials), f32 throughout
# ---------------------------------------------------------------------------
def _finalize_stats(stat, gamma, beta, m_true, cout):
    cp = stat.shape[-1]
    ssum = jnp.sum(stat[:, 0, :], axis=0)
    ssq = jnp.sum(stat[:, 1, :], axis=0)
    mean = ssum / m_true
    var = jnp.maximum(ssq / m_true - mean * mean, 0.0)
    gamma_p = jnp.zeros((cp,), jnp.float32).at[:cout].set(gamma.astype(jnp.float32))
    beta_p = jnp.zeros((cp,), jnp.float32).at[:cout].set(beta.astype(jnp.float32))
    inv = jax.lax.rsqrt(var + EPS)
    scale = gamma_p * inv
    shift = beta_p - mean * scale
    return scale.reshape(1, cp), shift.reshape(1, cp)


# ---------------------------------------------------------------------------
# Stage wrappers (conv -> BN(batch stats) -> ReLU), NHWC, bf16 activations
# ---------------------------------------------------------------------------
def _conv1x1_stats(buf, w1, gamma, beta, in_lo, in_hi):
    """1x1 conv over the concat buffer. The layer's input-channel window [in_lo, in_hi)
    is selected by zero-padding the weight rows to the full buffer width, so the growing
    activation is never sliced/copied in HBM (unwritten feature slots are zero)."""
    N, H, W, Ctot = buf.shape
    Cout = w1.shape[0]
    Cin = in_hi - in_lo
    Cp = _round_up(Cout, LANE)                       # lane-dense output channels
    M = N * H * W
    tm = min(DEFAULT_TM, _round_up(M, 8))
    Mp = _round_up(M, tm)

    x2d = buf.reshape(M, Ctot)
    if Mp != M:                                      # zero rows: no effect on BN sums
        x2d = jnp.pad(x2d, ((0, Mp - M), (0, 0)))
    wfull = jnp.zeros((Ctot, Cp), jnp.bfloat16)
    wfull = wfull.at[in_lo:in_hi, :Cout].set(w1.reshape(Cout, Cin).T.astype(jnp.bfloat16))

    z1, stat = _matmul_stats_call(x2d, wfull, tm)
    scale, shift = _finalize_stats(stat, gamma, beta, M, Cout)
    return z1[:M].reshape(N, H, W, Cp), scale, shift


def _conv3x3_stats(z1_4d, scale1, shift1, w2, gamma, beta):
    """3x3 conv with the 1x1 stage's BN+ReLU fused into the kernel input path."""
    N, H, W, C1p = z1_4d.shape
    Cout, Cin = w2.shape[0], w2.shape[1]
    C2p = _round_up(Cout, LANE)
    M = N * H * W
    th = 8 if H % 8 == 0 else H   # TODO(synk): generic row tiling when H is not a multiple of 8

    w9 = jnp.zeros((9, C1p, C2p), jnp.bfloat16)
    w9 = w9.at[:, :Cin, :Cout].set(
        jnp.transpose(w2, (2, 3, 1, 0)).reshape(9, Cin, Cout).astype(jnp.bfloat16))

    z2, stat = _conv3x3_fused_call(z1_4d, scale1, shift1, w9, th)
    scale, shift = _finalize_stats(stat.reshape(-1, 2, C2p), gamma, beta, M, Cout)
    return z2.reshape(M, C2p), scale, shift


def _layer_forward(buf, p, in_lo, in_hi):
    N, H, W, _ = buf.shape
    k = p["w2"].shape[0]
    M = N * H * W

    z1, sc1, sh1 = _conv1x1_stats(buf, p["w1"], p["g1"], p["b1"], in_lo, in_hi)
    z2, sc2, sh2 = _conv3x3_stats(z1, sc1, sh1, p["w2"], p["g2"], p["b2"])

    # Second-stage BN apply + ReLU (tiled, bf16 in/out, lane-dense stores).
    # TODO(synk): fuse this pass and the concat-buffer write into the next layer's 1x1
    #             kernel (per-channel scale/shift over the buffer + input_output_aliases).
    tm = min(DEFAULT_TM, _round_up(M, 8))
    Mp = _round_up(M, tm)
    if Mp != M:
        z2 = jnp.pad(z2, ((0, Mp - M), (0, 0)))
    feat = _bn_relu_call(z2, sc2, sh2, tm)
    return feat[:M, :k].reshape(N, H, W, k)


# ---------------------------------------------------------------------------
# DenseBlock
# ---------------------------------------------------------------------------
def init_dense_block_params(key, input_channels, num_layers, growth_rate):
    k0, k = input_channels, growth_rate
    params = []
    for i in range(num_layers):
        cin = k0 + i * k
        key, k1, k2 = jax.random.split(key, 3)
        w1 = 0.1 * jax.random.normal(k1, (4 * k, cin, 1, 1), jnp.float32)
        w2 = 0.1 * jax.random.normal(k2, (k, 4 * k, 3, 3), jnp.float32)
        params.append(dict(
            w1=w1, g1=jnp.ones((4 * k,), jnp.float32), b1=jnp.zeros((4 * k,), jnp.float32),
            w2=w2, g2=jnp.ones((k,), jnp.float32), b2=jnp.zeros((k,), jnp.float32)))
    return params


def dense_block_forward(x_nchw, params):
    """Input/output in NCHW (PyTorch convention).  Channel order of the output matches
    torch: out = cat(x, f0); out = cat(f_i, out) for i >= 1."""
    N, C0, H, W = x_nchw.shape
    L = len(params)
    k = params[0]["w2"].shape[0]                          # growth rate
    Ctot = C0 + L * k
    x = jnp.transpose(x_nchw, (0, 2, 3, 1)).astype(jnp.bfloat16)   # NHWC, bf16 activations

    # Preallocated concat buffer; final channel order is [f_{L-1}, ..., f_1, x, f_0].
    x_off = (L - 1) * k
    buf = jnp.zeros((N, H, W, Ctot), jnp.bfloat16)
    buf = jax.lax.dynamic_update_slice(buf, x, (0, 0, 0, x_off))

    for i in range(L):
        if i == 0:
            in_lo, in_hi, f_off = x_off, x_off + C0, x_off + C0
        else:
            in_lo, in_hi, f_off = (L - i) * k, Ctot, (L - 1 - i) * k
        feature = _layer_forward(buf, params[i], in_lo, in_hi)
        buf = jax.lax.dynamic_update_slice(buf, feature, (0, 0, 0, f_off))
    return jnp.transpose(buf, (0, 3, 1, 2)).astype(jnp.float32)


# ---------------------------------------------------------------------------
# Reference (same numeric pipeline: bf16 operands / f32 acc / f32 BN stats / bf16 z) via XLA
# ---------------------------------------------------------------------------
def _ref_bn_conv(x_nhwc, w, gamma, beta, pad):
    z = jax.lax.conv_general_dilated(
        x_nhwc.astype(jnp.bfloat16),
        jnp.transpose(w, (2, 3, 1, 0)).astype(jnp.bfloat16),
        window_strides=(1, 1), padding=[(pad, pad), (pad, pad)],
        dimension_numbers=("NHWC", "HWIO", "NHWC"),
        preferred_element_type=jnp.float32)
    mean = jnp.mean(z, axis=(0, 1, 2))
    var = jnp.maximum(jnp.mean(z * z, axis=(0, 1, 2)) - mean * mean, 0.0)
    scale = gamma * jax.lax.rsqrt(var + EPS)
    shift = beta - mean * scale
    zb = z.astype(jnp.bfloat16).astype(jnp.float32)      # mirror the kernel's bf16 z storage
    return jnp.maximum(zb * scale + shift, 0.0).astype(jnp.bfloat16)


def _ref_dense_block(x_nchw, params):
    x = jnp.transpose(x_nchw, (0, 2, 3, 1)).astype(jnp.bfloat16)

    def layer(z, p):
        h = _ref_bn_conv(z, p["w1"], p["g1"], p["b1"], 0)
        return _ref_bn_conv(h, p["w2"], p["g2"], p["b2"], 1)

    feature = layer(x, params[0])
    out = jnp.concatenate([x, feature], axis=-1)
    for i in range(1, len(params)):
        feature = layer(out, params[i])
        out = jnp.concatenate([feature, out], axis=-1)
    return jnp.transpose(out, (0, 3, 1, 2)).astype(jnp.float32)


if __name__ == "__main__":
    N, input_channels, H, W = 2, 4, 16, 16
    num_layers, growth_rate = 3, 4

    key = jax.random.PRNGKey(0)
    kx, kp = jax.random.split(key)
    x = jax.random.normal(kx, (N, input_channels, H, W), jnp.float32)
    params = init_dense_block_params(kp, input_channels, num_layers, growth_rate)

    fwd = jax.jit(dense_block_forward)
    out = jax.block_until_ready(fwd(x, params))

    # sanity: final channels = input_channels + num_layers * growth_rate
    assert out.shape == (N, input_channels + num_layers * growth_rate, H, W), out.shape

    ref = jax.block_until_ready(jax.jit(_ref_dense_block)(x, params))
    np.testing.assert_allclose(np.asarray(out, dtype=np.float32),
                               np.asarray(ref, dtype=np.float32),
                               rtol=3e-2, atol=3e-2)
    print("KERNEL_OK")
</pallas_src>

<mosaic_0001>
module attributes {stable_mosaic.version = 11 : i64} {
  func.func @_mm_stats_kernel(%arg0: i32, %arg1: memref<512x16xbf16, #tpu.memory_space<vmem>>, %arg2: memref<16x128xbf16, #tpu.memory_space<vmem>>, %arg3: memref<512x128xbf16, #tpu.memory_space<vmem>>, %arg4: memref<1x2x128xf32, #tpu.memory_space<vmem>>) attributes {dimension_semantics = [#tpu.dimension_semantics<parallel>], iteration_bounds = array<i64: 1>, scalar_prefetch = 0 : i64, scratch_operands = 0 : i64, tpu.core_type = #tpu.core_type<tc>, window_params = [{transform_indices = @transform_0, window_bounds = array<i64: 512, 16>}, {pipeline_mode = #tpu.pipeline_mode<synchronous>, transform_indices = @transform_1, window_bounds = array<i64: 16, 128>}, {transform_indices = @transform_2, window_bounds = array<i64: 512, 128>}, {transform_indices = @transform_3, window_bounds = array<i64: 1, 2, 128>}]} {
    %c0 = arith.constant 0 : index
    %c0_0 = arith.constant 0 : index
    %0 = vector.load %arg1[%c0, %c0_0] : memref<512x16xbf16, #tpu.memory_space<vmem>>, vector<512x16xbf16>
    %c0_1 = arith.constant 0 : index
    %c0_2 = arith.constant 0 : index
    %1 = vector.load %arg2[%c0_1, %c0_2] : memref<16x128xbf16, #tpu.memory_space<vmem>>, vector<16x128xbf16>
    %cst = arith.constant dense<0.000000e+00> : vector<512x128xf32>
    %2 = tpu.matmul %0, %1, %cst {dimension_numbers = #tpu.dot_dimension_numbers<[1], [0], [0], [1], [0, 0, 1, 1], [], []>} : vector<512x16xbf16>, vector<16x128xbf16>, vector<512x128xf32> -> vector<512x128xf32>
    %3 = arith.truncf %2 : vector<512x128xf32> to vector<512x128xbf16>
    %c0_3 = arith.constant 0 : index
    %c0_4 = arith.constant 0 : index
    %4 = vector.load %arg3[%c0_3, %c0_4] : memref<512x128xbf16, #tpu.memory_space<vmem>>, vector<512x128xbf16>
    tpu.vector_store %arg3[%c0_3, %c0_4], %3 {strides = array<i32>} : memref<512x128xbf16, #tpu.memory_space<vmem>>, vector<512x128xbf16>,
    %cst_5 = arith.constant dense<0.000000e+00> : vector<128xf32>
    %5 = vector.multi_reduction <add>, %2, %cst_5 [0] : vector<512x128xf32> to vector<128xf32>
    %6 = vector.shape_cast %5 : vector<128xf32> to vector<1x128xf32>
    %7 = arith.mulf %2, %2 : vector<512x128xf32>
    %cst_6 = arith.constant dense<0.000000e+00> : vector<128xf32>
    %8 = vector.multi_reduction <add>, %7, %cst_6 [0] : vector<512x128xf32> to vector<128xf32>
    %9 = vector.shape_cast %8 : vector<128xf32> to vector<1x128xf32>
    %10 = tpu.concatenate %6, %9 in 0 : vector<1x128xf32>, vector<1x128xf32> -> vector<2x128xf32>
    %c0_7 = arith.constant 0 : index
    %c0_8 = arith.constant 0 : index
    %c0_9 = arith.constant 0 : index
    %11 = vector.load %arg4[%c0_7, %c0_8, %c0_9] : memref<1x2x128xf32, #tpu.memory_space<vmem>>, vector<1x2x128xf32>
    %12 = vector.shape_cast %11 : vector<1x2x128xf32> to vector<2x128xf32>
    %13 = vector.shape_cast %10 : vector<2x128xf32> to vector<1x2x128xf32>
    tpu.vector_store %arg4[%c0_7, %c0_8, %c0_9], %13 {strides = array<i32>} : memref<1x2x128xf32, #tpu.memory_space<vmem>>, vector<1x2x128xf32>,
    return
  }
  func.func @transform_0(%arg0: i32) -> (i32, i32) {
    %c0_i32 = arith.constant 0 : i32
    %c0_i32_0 = arith.constant 0 : i32
    return %arg0, %c0_i32 : i32, i32
  }
  func.func @transform_1(%arg0: i32) -> (i32, i32) {
    %c0_i32 = arith.constant 0 : i32
    %c0_i32_0 = arith.constant 0 : i32
    %c0_i32_1 = arith.constant 0 : i32
    return %c0_i32, %c0_i32_0 : i32, i32
  }
  func.func @transform_2(%arg0: i32) -> (i32, i32) {
    %c0_i32 = arith.constant 0 : i32
    %c0_i32_0 = arith.constant 0 : i32
    return %arg0, %c0_i32 : i32, i32
  }
  func.func @transform_3(%arg0: i32) -> (i32, i32, i32) {
    %c0_i32 = arith.constant 0 : i32
    %c0_i32_0 = arith.constant 0 : i32
    %c0_i32_1 = arith.constant 0 : i32
    return %arg0, %c0_i32, %c0_i32_0 : i32, i32, i32
  }
}

module attributes {stable_mosaic.version = 11 : i64} {
  func.func @_conv3x3_fused_kernel(%arg0: i32, %arg1: i32, %arg2: memref<1x8x16x128xbf16, #tpu.memory_space<vmem>>, %arg3: memref<1x1x16x128xbf16, #tpu.memory_space<vmem>>, %arg4: memref<1x1x16x128xbf16, #tpu.memory_space<vmem>>, %arg5: memref<1x128xf32, #tpu.memory_space<vmem>>, %arg6: memref<1x128xf32, #tpu.memory_space<vmem>>, %arg7: memref<9x128x128xbf16, #tpu.memory_space<vmem>>, %arg8: memref<1x128x128xbf16, #tpu.memory_space<vmem>>, %arg9: memref<1x1x2x128xf32, #tpu.memory_space<vmem>>, %arg10: memref<128x128xf32, #tpu.memory_space<vmem>>) attributes {dimension_semantics = [#tpu.dimension_semantics<parallel>, #tpu.dimension_semantics<parallel>], iteration_bounds = array<i64: 2, 2>, scalar_prefetch = 0 : i64, scratch_operands = 1 : i64, tpu.core_type = #tpu.core_type<tc>, window_params = [{transform_indices = @transform_0, window_bounds = array<i64: 1, 8, 16, 128>}, {transform_indices = @transform_1, window_bounds = array<i64: 1, 1, 16, 128>}, {transform_indices = @transform_2, window_bounds = array<i64: 1, 1, 16, 128>}, {pipeline_mode = #tpu.pipeline_mode<synchronous>, transform_indices = @transform_3, window_bounds = array<i64: 1, 128>}, {pipeline_mode = #tpu.pipeline_mode<synchronous>, transform_indices = @transform_4, window_bounds = array<i64: 1, 128>}, {pipeline_mode = #tpu.pipeline_mode<synchronous>, transform_indices = @transform_5, window_bounds = array<i64: 9, 128, 128>}, {transform_indices = @transform_6, window_bounds = array<i64: 1, 128, 128>}, {transform_indices = @transform_7, window_bounds = array<i64: 1, 1, 2, 128>}]} {
    %c0 = arith.constant 0 : index
    %c0_0 = arith.constant 0 : index
    %0 = vector.load %arg5[%c0, %c0_0] : memref<1x128xf32, #tpu.memory_space<vmem>>, vector<1x128xf32>
    %1 = vector.shape_cast %0 : vector<1x128xf32> to vector<1x1x128xf32>
    %c0_1 = arith.constant 0 : index
    %c0_2 = arith.constant 0 : index
    %2 = vector.load %arg6[%c0_1, %c0_2] : memref<1x128xf32, #tpu.memory_space<vmem>>, vector<1x128xf32>
    %3 = vector.shape_cast %2 : vector<1x128xf32> to vector<1x1x128xf32>
    %c0_3 = arith.constant 0 : index
    %c0_4 = arith.constant 0 : index
    %c0_5 = arith.constant 0 : index
    %c0_6 = arith.constant 0 : index
    %4 = vector.load %arg2[%c0_3, %c0_4, %c0_5, %c0_6] : memref<1x8x16x128xbf16, #tpu.memory_space<vmem>>, vector<1x8x16x128xbf16>
    %5 = vector.shape_cast %4 : vector<1x8x16x128xbf16> to vector<8x16x128xbf16>
    %6 = arith.extf %5 : vector<8x16x128xbf16> to vector<8x16x128xf32>
    %7 = vector.broadcast %1 : vector<1x1x128xf32> to vector<8x16x128xf32>
    %8 = arith.mulf %6, %7 : vector<8x16x128xf32>
    %9 = vector.broadcast %3 : vector<1x1x128xf32> to vector<8x16x128xf32>
    %10 = arith.addf %8, %9 : vector<8x16x128xf32>
    %cst = arith.constant 0.000000e+00 : f32
    %11 = vector.broadcast %cst : f32 to vector<8x16x128xf32>
    %12 = arith.maximumf %10, %11 : vector<8x16x128xf32>
    %13 = arith.truncf %12 : vector<8x16x128xf32> to vector<8x16x128xbf16>
    %c0_7 = arith.constant 0 : index
    %c0_8 = arith.constant 0 : index
    %c0_9 = arith.constant 0 : index
    %c0_10 = arith.constant 0 : index
    %14 = vector.load %arg3[%c0_7, %c0_8, %c0_9, %c0_10] : memref<1x1x16x128xbf16, #tpu.memory_space<vmem>>, vector<1x1x16x128xbf16>
    %15 = vector.shape_cast %14 : vector<1x1x16x128xbf16> to vector<1x16x128xbf16>
    %16 = arith.extf %15 : vector<1x16x128xbf16> to vector<1x16x128xf32>
    %17 = vector.broadcast %1 : vector<1x1x128xf32> to vector<1x16x128xf32>
    %18 = arith.mulf %16, %17 : vector<1x16x128xf32>
    %19 = vector.broadcast %3 : vector<1x1x128xf32> to vector<1x16x128xf32>
    %20 = arith.addf %18, %19 : vector<1x16x128xf32>
    %cst_11 = arith.constant 0.000000e+00 : f32
    %21 = vector.broadcast %cst_11 : f32 to vector<1x16x128xf32>
    %22 = arith.maximumf %20, %21 : vector<1x16x128xf32>
    %23 = arith.truncf %22 : vector<1x16x128xf32> to vector<1x16x128xbf16>
    %c0_12 = arith.constant 0 : index
    %c0_13 = arith.constant 0 : index
    %c0_14 = arith.constant 0 : index
    %c0_15 = arith.constant 0 : index
    %24 = vector.load %arg4[%c0_12, %c0_13, %c0_14, %c0_15] : memref<1x1x16x128xbf16, #tpu.memory_space<vmem>>, vector<1x1x16x128xbf16>
    %25 = vector.shape_cast %24 : vector<1x1x16x128xbf16> to vector<1x16x128xbf16>
    %26 = arith.extf %25 : vector<1x16x128xbf16> to vector<1x16x128xf32>
    %27 = vector.broadcast %1 : vector<1x1x128xf32> to vector<1x16x128xf32>
    %28 = arith.mulf %26, %27 : vector<1x16x128xf32>
    %29 = vector.broadcast %3 : vector<1x1x128xf32> to vector<1x16x128xf32>
    %30 = arith.addf %28, %29 : vector<1x16x128xf32>
    %cst_16 = arith.constant 0.000000e+00 : f32
    %31 = vector.broadcast %cst_16 : f32 to vector<1x16x128xf32>
    %32 = arith.maximumf %30, %31 : vector<1x16x128xf32>
    %33 = arith.truncf %32 : vector<1x16x128xf32> to vector<1x16x128xbf16>
    %c0_i32 = arith.constant 0 : i32
    %34 = arith.cmpi eq, %arg1, %c0_i32 : i32
    %cst_17 = arith.constant 0.000000e+00 : bf16
    %35 = vector.broadcast %cst_17 : bf16 to vector<1x16x128xbf16>
    %36 = arith.select %34, %35, %23 : vector<1x16x128xbf16>
    %c1_i32 = arith.constant 1 : i32
    %37 = arith.cmpi eq, %arg1, %c1_i32 : i32
    %cst_18 = arith.constant 0.000000e+00 : bf16
    %38 = vector.broadcast %cst_18 : bf16 to vector<1x16x128xbf16>
    %39 = arith.select %37, %38, %33 : vector<1x16x128xbf16>
    %40 = tpu.concatenate %36, %13, %39 in 0 : vector<1x16x128xbf16>, vector<8x16x128xbf16>, vector<1x16x128xbf16> -> vector<10x16x128xbf16>
    %cst_19 = arith.constant 0.000000e+00 : bf16
    %41 = vector.broadcast %cst_19 : bf16 to vector<10x1x128xbf16>
    %42 = tpu.concatenate %41, %40, %41 in 1 : vector<10x1x128xbf16>, vector<10x16x128xbf16>, vector<10x1x128xbf16> -> vector<10x18x128xbf16>
    %43 = vector.extract_strided_slice %42 {offsets = [0, 0, 0], sizes = [8, 18, 128], strides = [1, 1, 1]} : vector<10x18x128xbf16> to vector<8x18x128xbf16>
    %44 = vector.extract_strided_slice %43 {offsets = [0, 0, 0], sizes = [8, 16, 128], strides = [1, 1, 1]} : vector<8x18x128xbf16> to vector<8x16x128xbf16>
    %45 = vector.shape_cast %44 : vector<8x16x128xbf16> to vector<128x128xbf16>
    %c0_20 = arith.constant 0 : index
    %c0_21 = arith.constant 0 : index
    %c0_22 = arith.constant 0 : index
    %46 = vector.load %arg7[%c0_20, %c0_21, %c0_22] : memref<9x128x128xbf16, #tpu.memory_space<vmem>>, vector<1x128x128xbf16>
    %47 = vector.shape_cast %46 : vector<1x128x128xbf16> to vector<128x128xbf16>
    %cst_23 = arith.constant dense<0.000000e+00> : vector<128x128xf32>
    %48 = tpu.matmul %45, %47, %cst_23 {dimension_numbers = #tpu.dot_dimension_numbers<[1], [0], [0], [1], [0, 0, 1, 1], [], []>} : vector<128x128xbf16>, vector<128x128xbf16>, vector<128x128xf32> -> vector<128x128xf32>
    %c0_24 = arith.constant 0 : index
    %c0_25 = arith.constant 0 : index
    %49 = vector.load %arg10[%c0_24, %c0_25] : memref<128x128xf32, #tpu.memory_space<vmem>>, vector<128x128xf32>
    tpu.vector_store %arg10[%c0_24, %c0_25], %48 {strides = array<i32>} : memref<128x128xf32, #tpu.memory_space<vmem>>, vector<128x128xf32>,
    %50 = vector.extract_strided_slice %43 {offsets = [0, 1, 0], sizes = [8, 16, 128], strides = [1, 1, 1]} : vector<8x18x128xbf16> to vector<8x16x128xbf16>
    %51 = vector.shape_cast %50 : vector<8x16x128xbf16> to vector<128x128xbf16>
    %c1 = arith.constant 1 : index
    %c0_26 = arith.constant 0 : index
    %c0_27 = arith.constant 0 : index
    %52 = vector.load %arg7[%c1, %c0_26, %c0_27] : memref<9x128x128xbf16, #tpu.memory_space<vmem>>, vector<1x128x128xbf16>
    %53 = vector.shape_cast %52 : vector<1x128x128xbf16> to vector<128x128xbf16>
    %cst_28 = arith.constant dense<0.000000e+00> : vector<128x128xf32>
    %54 = tpu.matmul %51, %53, %cst_28 {dimension_numbers = #tpu.dot_dimension_numbers<[1], [0], [0], [1], [0, 0, 1, 1], [], []>} : vector<128x128xbf16>, vector<128x128xbf16>, vector<128x128xf32> -> vector<128x128xf32>
    %c0_29 = arith.constant 0 : index
    %c0_30 = arith.constant 0 : index
    %55 = vector.load %arg10[%c0_29, %c0_30] : memref<128x128xf32, #tpu.memory_space<vmem>>, vector<128x128xf32>
    %56 = arith.addf %55, %54 : vector<128x128xf32>
    %c0_31 = arith.constant 0 : index
    %c0_32 = arith.constant 0 : index
    %57 = vector.load %arg10[%c0_31, %c0_32] : memref<128x128xf32, #tpu.memory_space<vmem>>, vector<128x128xf32>
    tpu.vector_store %arg10[%c0_31, %c0_32], %56 {strides = array<i32>} : memref<128x128xf32, #tpu.memory_space<vmem>>, vector<128x128xf32>,
    %58 = vector.extract_strided_slice %43 {offsets = [0, 2, 0], sizes = [8, 16, 128], strides = [1, 1, 1]} : vector<8x18x128xbf16> to vector<8x16x128xbf16>
    %59 = vector.shape_cast %58 : vector<8x16x128xbf16> to vector<128x128xbf16>
    %c2 = arith.constant 2 : index
    %c0_33 = arith.constant 0 : index
    %c0_34 = arith.constant 0 : index
    %60 = vector.load %arg7[%c2, %c0_33, %c0_34] : memref<9x128x128xbf16, #tpu.memory_space<vmem>>, vector<1x128x128xbf16>
    %61 = vector.shape_cast %60 : vector<1x128x128xbf16> to vector<128x128xbf16>
    %cst_35 = arith.constant dense<0.000000e+00> : vector<128x128xf32>
    %62 = tpu.matmul %59, %61, %cst_35 {dimension_numbers = #tpu.dot_dimension_numbers<[1], [0], [0], [1], [0, 0, 1, 1], [], []>} : vector<128x128xbf16>, vector<128x128xbf16>, vector<128x128xf32> -> vector<128x128xf32>
    %c0_36 = arith.constant 0 : index
    %c0_37 = arith.constant 0 : index
    %63 = vector.load %arg10[%c0_36, %c0_37] : memref<128x128xf32, #tpu.memory_space<vmem>>, vector<128x128xf32>
    %64 = arith.addf %63, %62 : vector<128x128xf32>
    %c0_38 = arith.constant 0 : index
    %c0_39 = arith.constant 0 : index
    %65 = vector.load %arg10[%c0_38, %c0_39] : memref<128x128xf32, #tpu.memory_space<vmem>>, vector<128x128xf32>
    tpu.vector_store %arg10[%c0_38, %c0_39], %64 {strides = array<i32>} : memref<128x128xf32, #tpu.memory_space<vmem>>, vector<128x128xf32>,
    %66 = vector.extract_strided_slice %42 {offsets = [1, 0, 0], sizes = [8, 18, 128], strides = [1, 1, 1]} : vector<10x18x128xbf16> to vector<8x18x128xbf16>
    %67 = vector.extract_strided_slice %66 {offsets = [0, 0, 0], sizes = [8, 16, 128], strides = [1, 1, 1]} : vector<8x18x128xbf16> to vector<8x16x128xbf16>
    %68 = vector.shape_cast %67 : vector<8x16x128xbf16> to vector<128x128xbf16>
    %c3 = arith.constant 3 : index
    %c0_40 = arith.constant 0 : index
    %c0_41 = arith.constant 0 : index
    %69 = vector.load %arg7[%c3, %c0_40, %c0_41] : memref<9x128x128xbf16, #tpu.memory_space<vmem>>, vector<1x128x128xbf16>
    %70 = vector.shape_cast %69 : vector<1x128x128xbf16> to vector<128x128xbf16>
    %cst_42 = arith.constant dense<0.000000e+00> : vector<128x128xf32>
    %71 = tpu.matmul %68, %70, %cst_42 {dimension_numbers = #tpu.dot_dimension_numbers<[1], [0], [0], [1], [0, 0, 1, 1], [], []>} : vector<128x128xbf16>, vector<128x128xbf16>, vector<128x128xf32> -> vector<128x128xf32>
    %c0_43 = arith.constant 0 : index
    %c0_44 = arith.constant 0 : index
    %72 = vector.load %arg10[%c0_43, %c0_44] : memref<128x128xf32, #tpu.memory_space<vmem>>, vector<128x128xf32>
    %73 = arith.addf %72, %71 : vector<128x128xf32>
    %c0_45 = arith.constant 0 : index
    %c0_46 = arith.constant 0 : index
    %74 = vector.load %arg10[%c0_45, %c0_46] : memref<128x128xf32, #tpu.memory_space<vmem>>, vector<128x128xf32>
    tpu.vector_store %arg10[%c0_45, %c0_46], %73 {strides = array<i32>} : memref<128x128xf32, #tpu.memory_space<vmem>>, vector<128x128xf32>,
    %75 = vector.extract_strided_slice %66 {offsets = [0, 1, 0], sizes = [8, 16, 128], strides = [1, 1, 1]} : vector<8x18x128xbf16> to vector<8x16x128xbf16>
    %76 = vector.shape_cast %75 : vector<8x16x128xbf16> to vector<128x128xbf16>
    %c4 = arith.constant 4 : index
    %c0_47 = arith.constant 0 : index
    %c0_48 = arith.constant 0 : index
    %77 = vector.load %arg7[%c4, %c0_47, %c0_48] : memref<9x128x128xbf16, #tpu.memory_space<vmem>>, vector<1x128x128xbf16>
    %78 = vector.shape_cast %77 : vector<1x128x128xbf16> to vector<128x128xbf16>
    %cst_49 = arith.constant dense<0.000000e+00> : vector<128x128xf32>
    %79 = tpu.matmul %76, %78, %cst_49 {dimension_numbers = #tpu.dot_dimension_numbers<[1], [0], [0], [1], [0, 0, 1, 1], [], []>} : vector<128x128xbf16>, vector<128x128xbf16>, vector<128x128xf32> -> vector<128x128xf32>
    %c0_50 = arith.constant 0 : index
    %c0_51 = arith.constant 0 : index
    %80 = vector.load %arg10[%c0_50, %c0_51] : memref<128x128xf32, #tpu.memory_space<vmem>>, vector<128x128xf32>
    %81 = arith.addf %80, %79 : vector<128x128xf32>
    %c0_52 = arith.constant 0 : index
    %c0_53 = arith.constant 0 : index
    %82 = vector.load %arg10[%c0_52, %c0_53] : memref<128x128xf32, #tpu.memory_space<vmem>>, vector<128x128xf32>
    tpu.vector_store %arg10[%c0_52, %c0_53], %81 {strides = array<i32>} : memref<128x128xf32, #tpu.memory_space<vmem>>, vector<128x128xf32>,
    %83 = vector.extract_strided_slice %66 {offsets = [0, 2, 0], sizes = [8, 16, 128], strides = [1, 1, 1]} : vector<8x18x128xbf16> to vector<8x16x128xbf16>
    %84 = vector.shape_cast %83 : vector<8x16x128xbf16> to vector<128x128xbf16>
    %c5 = arith.constant 5 : index
    %c0_54 = arith.constant 0 : index
    %c0_55 = arith.constant 0 : index
    %85 = vector.load %arg7[%c5, %c0_54, %c0_55] : memref<9x128x128xbf16, #tpu.memory_space<vmem>>, vector<1x128x128xbf16>
    %86 = vector.shape_cast %85 : vector<1x128x128xbf16> to vector<128x128xbf16>
    %cst_56 = arith.constant dense<0.000000e+00> : vector<128x128xf32>
    %87 = tpu.matmul %84, %86, %cst_56 {dimension_numbers = #tpu.dot_dimension_numbers<[1], [0], [0], [1], [0, 0, 1, 1], [], []>} : vector<128x128xbf16>, vector<128x128xbf16>, vector<128x128xf32> -> vector<128x128xf32>
    %c0_57 = arith.constant 0 : index
    %c0_58 = arith.constant 0 : index
    %88 = vector.load %arg10[%c0_57, %c0_58] : memref<128x128xf32, #tpu.memory_space<vmem>>, vector<128x128xf32>
    %89 = arith.addf %88, %87 : vector<128x128xf32>
    %c0_59 = arith.constant 0 : index
    %c0_60 = arith.constant 0 : index
    %90 = vector.load %arg10[%c0_59, %c0_60] : memref<128x128xf32, #tpu.memory_space<vmem>>, vector<128x128xf32>
    tpu.vector_store %arg10[%c0_59, %c0_60], %89 {strides = array<i32>} : memref<128x128xf32, #tpu.memory_space<vmem>>, vector<128x128xf32>,
    %91 = vector.extract_strided_slice %42 {offsets = [2, 0, 0], sizes = [8, 18, 128], strides = [1, 1, 1]} : vector<10x18x128xbf16> to vector<8x18x128xbf16>
    %92 = vector.extract_strided_slice %91 {offsets = [0, 0, 0], sizes = [8, 16, 128], strides = [1, 1, 1]} : vector<8x18x128xbf16> to vector<8x16x128xbf16>
    %93 = vector.shape_cast %92 : vector<8x16x128xbf16> to vector<128x128xbf16>
    %c6 = arith.constant 6 : index
    %c0_61 = arith.constant 0 : index
    %c0_62 = arith.constant 0 : index
    %94 = vector.load %arg7[%c6, %c0_61, %c0_62] : memref<9x128x128xbf16, #tpu.memory_space<vmem>>, vector<1x128x128xbf16>
    %95 = vector.shape_cast %94 : vector<1x128x128xbf16> to vector<128x128xbf16>
    %cst_63 = arith.constant dense<0.000000e+00> : vector<128x128xf32>
    %96 = tpu.matmul %93, %95, %cst_63 {dimension_numbers = #tpu.dot_dimension_numbers<[1], [0], [0], [1], [0, 0, 1, 1], [], []>} : vector<128x128xbf16>, vector<128x128xbf16>, vector<128x128xf32> -> vector<128x128xf32>
    %c0_64 = arith.constant 0 : index
    %c0_65 = arith.constant 0 : index
    %97 = vector.load %arg10[%c0_64, %c0_65] : memref<128x128xf32, #tpu.memory_space<vmem>>, vector<128x128xf32>
    %98 = arith.addf %97, %96 : vector<128x128xf32>
    %c0_66 = arith.constant 0 : index
    %c0_67 = arith.constant 0 : index
    %99 = vector.load %arg10[%c0_66, %c0_67] : memref<128x128xf32, #tpu.memory_space<vmem>>, vector<128x128xf32>
    tpu.vector_store %arg10[%c0_66, %c0_67], %98 {strides = array<i32>} : memref<128x128xf32, #tpu.memory_space<vmem>>, vector<128x128xf32>,
    %100 = vector.extract_strided_slice %91 {offsets = [0, 1, 0], sizes = [8, 16, 128], strides = [1, 1, 1]} : vector<8x18x128xbf16> to vector<8x16x128xbf16>
    %101 = vector.shape_cast %100 : vector<8x16x128xbf16> to vector<128x128xbf16>
    %c7 = arith.constant 7 : index
    %c0_68 = arith.constant 0 : index
    %c0_69 = arith.constant 0 : index
    %102 = vector.load %arg7[%c7, %c0_68, %c0_69] : memref<9x128x128xbf16, #tpu.memory_space<vmem>>, vector<1x128x128xbf16>
    %103 = vector.shape_cast %102 : vector<1x128x128xbf16> to vector<128x128xbf16>
    %cst_70 = arith.constant dense<0.000000e+00> : vector<128x128xf32>
    %104 = tpu.matmul %101, %103, %cst_70 {dimension_numbers = #tpu.dot_dimension_numbers<[1], [0], [0], [1], [0, 0, 1, 1], [], []>} : vector<128x128xbf16>, vector<128x128xbf16>, vector<128x128xf32> -> vector<128x128xf32>
    %c0_71 = arith.constant 0 : index
    %c0_72 = arith.constant 0 : index
    %105 = vector.load %arg10[%c0_71, %c0_72] : memref<128x128xf32, #tpu.memory_space<vmem>>, vector<128x128xf32>
    %106 = arith.addf %105, %104 : vector<128x128xf32>
    %c0_73 = arith.constant 0 : index
    %c0_74 = arith.constant 0 : index
    %107 = vector.load %arg10[%c0_73, %c0_74] : memref<128x128xf32, #tpu.memory_space<vmem>>, vector<128x128xf32>
    tpu.vector_store %arg10[%c0_73, %c0_74], %106 {strides = array<i32>} : memref<128x128xf32, #tpu.memory_space<vmem>>, vector<128x128xf32>,
    %108 = vector.extract_strided_slice %91 {offsets = [0, 2, 0], sizes = [8, 16, 128], strides = [1, 1, 1]} : vector<8x18x128xbf16> to vector<8x16x128xbf16>
    %109 = vector.shape_cast %108 : vector<8x16x128xbf16> to vector<128x128xbf16>
    %c8 = arith.constant 8 : index
    %c0_75 = arith.constant 0 : index
    %c0_76 = arith.constant 0 : index
    %110 = vector.load %arg7[%c8, %c0_75, %c0_76] : memref<9x128x128xbf16, #tpu.memory_space<vmem>>, vector<1x128x128xbf16>
    %111 = vector.shape_cast %110 : vector<1x128x128xbf16> to vector<128x128xbf16>
    %cst_77 = arith.constant dense<0.000000e+00> : vector<128x128xf32>
    %112 = tpu.matmul %109, %111, %cst_77 {dimension_numbers = #tpu.dot_dimension_numbers<[1], [0], [0], [1], [0, 0, 1, 1], [], []>} : vector<128x128xbf16>, vector<128x128xbf16>, vector<128x128xf32> -> vector<128x128xf32>
    %c0_78 = arith.constant 0 : index
    %c0_79 = arith.constant 0 : index
    %113 = vector.load %arg10[%c0_78, %c0_79] : memref<128x128xf32, #tpu.memory_space<vmem>>, vector<128x128xf32>
    %114 = arith.addf %113, %112 : vector<128x128xf32>
    %c0_80 = arith.constant 0 : index
    %c0_81 = arith.constant 0 : index
    %115 = vector.load %arg10[%c0_80, %c0_81] : memref<128x128xf32, #tpu.memory_space<vmem>>, vector<128x128xf32>
    tpu.vector_store %arg10[%c0_80, %c0_81], %114 {strides = array<i32>} : memref<128x128xf32, #tpu.memory_space<vmem>>, vector<128x128xf32>,
    %c0_82 = arith.constant 0 : index
    %c0_83 = arith.constant 0 : index
    %116 = vector.load %arg10[%c0_82, %c0_83] : memref<128x128xf32, #tpu.memory_space<vmem>>, vector<128x128xf32>
    %117 = arith.truncf %116 : vector<128x128xf32> to vector<128x128xbf16>
    %c0_84 = arith.constant 0 : index
    %c0_85 = arith.constant 0 : index
    %c0_86 = arith.constant 0 : index
    %118 = vector.load %arg8[%c0_84, %c0_85, %c0_86] : memref<1x128x128xbf16, #tpu.memory_space<vmem>>, vector<1x128x128xbf16>
    %119 = vector.shape_cast %118 : vector<1x128x128xbf16> to vector<128x128xbf16>
    %120 = vector.shape_cast %117 : vector<128x128xbf16> to vector<1x128x128xbf16>
    tpu.vector_store %arg8[%c0_84, %c0_85, %c0_86], %120 {strides = array<i32>} : memref<1x128x128xbf16, #tpu.memory_space<vmem>>, vector<1x128x128xbf16>,
    %cst_87 = arith.constant dense<0.000000e+00> : vector<128xf32>
    %121 = vector.multi_reduction <add>, %116, %cst_87 [0] : vector<128x128xf32> to vector<128xf32>
    %122 = vector.shape_cast %121 : vector<128xf32> to vector<1x128xf32>
    %123 = arith.mulf %116, %116 : vector<128x128xf32>
    %cst_88 = arith.constant dense<0.000000e+00> : vector<128xf32>
    %124 = vector.multi_reduction <add>, %123, %cst_88 [0] : vector<128x128xf32> to vector<128xf32>
    %125 = vector.shape_cast %124 : vector<128xf32> to vector<1x128xf32>
    %126 = tpu.concatenate %122, %125 in 0 : vector<1x128xf32>, vector<1x128xf32> -> vector<2x128xf32>
    %c0_89 = arith.constant 0 : index
    %c0_90 = arith.constant 0 : index
    %c0_91 = arith.constant 0 : index
    %c0_92 = arith.constant 0 : index
    %127 = vector.load %arg9[%c0_89, %c0_90, %c0_91, %c0_92] : memref<1x1x2x128xf32, #tpu.memory_space<vmem>>, vector<1x1x2x128xf32>
    %128 = vector.shape_cast %127 : vector<1x1x2x128xf32> to vector<2x128xf32>
    %129 = vector.shape_cast %126 : vector<2x128xf32> to vector<1x1x2x128xf32>
    tpu.vector_store %arg9[%c0_89, %c0_90, %c0_91, %c0_92], %129 {strides = array<i32>} : memref<1x1x2x128xf32, #tpu.memory_space<vmem>>, vector<1x1x2x128xf32>,
    return
  }
  func.func @transform_0(%arg0: i32, %arg1: i32) -> (i32, i32, i32, i32) {
    %c0_i32 = arith.constant 0 : i32
    %c0_i32_0 = arith.constant 0 : i32
    %c0_i32_1 = arith.constant 0 : i32
    return %arg0, %arg1, %c0_i32, %c0_i32_0 : i32, i32, i32, i32
  }
  func.func @transform_1(%arg0: i32, %arg1: i32) -> (i32, i32, i32, i32) {
    %c8_i32 = arith.constant 8 : i32
    %0 = arith.muli %arg1, %c8_i32 : i32
    %c1_i32 = arith.constant 1 : i32
    %1 = arith.subi %0, %c1_i32 : i32
    %c0_i32 = arith.constant 0 : i32
    %2 = arith.maxsi %1, %c0_i32 : i32
    %c0_i32_0 = arith.constant 0 : i32
    %c0_i32_1 = arith.constant 0 : i32
    %c0_i32_2 = arith.constant 0 : i32
    return %arg0, %2, %c0_i32_0, %c0_i32_1 : i32, i32, i32, i32
  }
  func.func @transform_2(%arg0: i32, %arg1: i32) -> (i32, i32, i32, i32) {
    %c8_i32 = arith.constant 8 : i32
    %0 = arith.muli %arg1, %c8_i32 : i32
    %c8_i32_0 = arith.constant 8 : i32
    %1 = arith.addi %0, %c8_i32_0 : i32
    %c15_i32 = arith.constant 15 : i32
    %2 = arith.minsi %1, %c15_i32 : i32
    %c0_i32 = arith.constant 0 : i32
    %c0_i32_1 = arith.constant 0 : i32
    %c0_i32_2 = arith.constant 0 : i32
    return %arg0, %2, %c0_i32, %c0_i32_1 : i32, i32, i32, i32
  }
  func.func @transform_3(%arg0: i32, %arg1: i32) -> (i32, i32) {
    %c0_i32 = arith.constant 0 : i32
    %c0_i32_0 = arith.constant 0 : i32
    %c0_i32_1 = arith.constant 0 : i32
    return %c0_i32, %c0_i32_0 : i32, i32
  }
  func.func @transform_4(%arg0: i32, %arg1: i32) -> (i32, i32) {
    %c0_i32 = arith.constant 0 : i32
    %c0_i32_0 = arith.constant 0 : i32
    %c0_i32_1 = arith.constant 0 : i32
    return %c0_i32, %c0_i32_0 : i32, i32
  }
  func.func @transform_5(%arg0: i32, %arg1: i32) -> (i32, i32, i32) {
    %c0_i32 = arith.constant 0 : i32
    %c0_i32_0 = arith.constant 0 : i32
    %c0_i32_1 = arith.constant 0 : i32
    %c0_i32_2 = arith.constant 0 : i32
    return %c0_i32, %c0_i32_0, %c0_i32_1 : i32, i32, i32
  }
  func.func @transform_6(%arg0: i32, %arg1: i32) -> (i32, i32, i32) {
    %c0_i32 = arith.constant 0 : i32
    %c0_i32_0 = arith.constant 0 : i32
    return %arg0, %arg1, %c0_i32 : i32, i32, i32
  }
  func.func @transform_7(%arg0: i32, %arg1: i32) -> (i32, i32, i32, i32) {
    %c0_i32 = arith.constant 0 : i32
    %c0_i32_0 = arith.constant 0 : i32
    %c0_i32_1 = arith.constant 0 : i32
    return %arg0, %arg1, %c0_i32, %c0_i32_0 : i32, i32, i32, i32
  }
}

module attributes {stable_mosaic.version = 11 : i64} {
  func.func @_bn_relu_kernel(%arg0: i32, %arg1: memref<512x128xbf16, #tpu.memory_space<vmem>>, %arg2: memref<1x128xf32, #tpu.memory_space<vmem>>, %arg3: memref<1x128xf32, #tpu.memory_space<vmem>>, %arg4: memref<512x128xbf16, #tpu.memory_space<vmem>>) attributes {dimension_semantics = [#tpu.dimension_semantics<parallel>], iteration_bounds = array<i64: 1>, scalar_prefetch = 0 : i64, scratch_operands = 0 : i64, tpu.core_type = #tpu.core_type<tc>, window_params = [{transform_indices = @transform_0, window_bounds = array<i64: 512, 128>}, {pipeline_mode = #tpu.pipeline_mode<synchronous>, transform_indices = @transform_1, window_bounds = array<i64: 1, 128>}, {pipeline_mode = #tpu.pipeline_mode<synchronous>, transform_indices = @transform_2, window_bounds = array<i64: 1, 128>}, {transform_indices = @transform_3, window_bounds = array<i64: 512, 128>}]} {
    %c0 = arith.constant 0 : index
    %c0_0 = arith.constant 0 : index
    %0 = vector.load %arg1[%c0, %c0_0] : memref<512x128xbf16, #tpu.memory_space<vmem>>, vector<512x128xbf16>
    %1 = arith.extf %0 : vector<512x128xbf16> to vector<512x128xf32>
    %c0_1 = arith.constant 0 : index
    %c0_2 = arith.constant 0 : index
    %2 = vector.load %arg2[%c0_1, %c0_2] : memref<1x128xf32, #tpu.memory_space<vmem>>, vector<1x128xf32>
    %3 = vector.broadcast %2 : vector<1x128xf32> to vector<512x128xf32>
    %4 = arith.mulf %1, %3 : vector<512x128xf32>
    %c0_3 = arith.constant 0 : index
    %c0_4 = arith.constant 0 : index
    %5 = vector.load %arg3[%c0_3, %c0_4] : memref<1x128xf32, #tpu.memory_space<vmem>>, vector<1x128xf32>
    %6 = vector.broadcast %5 : vector<1x128xf32> to vector<512x128xf32>
    %7 = arith.addf %4, %6 : vector<512x128xf32>
    %cst = arith.constant 0.000000e+00 : f32
    %8 = vector.broadcast %cst : f32 to vector<512x128xf32>
    %9 = arith.maximumf %7, %8 : vector<512x128xf32>
    %10 = arith.truncf %9 : vector<512x128xf32> to vector<512x128xbf16>
    %c0_5 = arith.constant 0 : index
    %c0_6 = arith.constant 0 : index
    %11 = vector.load %arg4[%c0_5, %c0_6] : memref<512x128xbf16, #tpu.memory_space<vmem>>, vector<512x128xbf16>
    tpu.vector_store %arg4[%c0_5, %c0_6], %10 {strides = array<i32>} : memref<512x128xbf16, #tpu.memory_space<vmem>>, vector<512x128xbf16>,
    return
  }
  func.func @transform_0(%arg0: i32) -> (i32, i32) {
    %c0_i32 = arith.constant 0 : i32
    %c0_i32_0 = arith.constant 0 : i32
    return %arg0, %c0_i32 : i32, i32
  }
  func.func @transform_1(%arg0: i32) -> (i32, i32) {
    %c0_i32 = arith.constant 0 : i32
    %c0_i32_0 = arith.constant 0 : i32
    %c0_i32_1 = arith.constant 0 : i32
    return %c0_i32, %c0_i32_0 : i32, i32
  }
  func.func @transform_2(%arg0: i32) -> (i32, i32) {
    %c0_i32 = arith.constant 0 : i32
    %c0_i32_0 = arith.constant 0 : i32
    %c0_i32_1 = arith.constant 0 : i32
    return %c0_i32, %c0_i32_0 : i32, i32
  }
  func.func @transform_3(%arg0: i32) -> (i32, i32) {
    %c0_i32 = arith.constant 0 : i32
    %c0_i32_0 = arith.constant 0 : i32
    return %arg0, %c0_i32 : i32, i32
  }
}

</mosaic_0001>

<bundles_post_ra>
// kernel: dense_block_forward.11
= control target key start
LH: loop header
LB: loop body
LE: loop exit
PB: predicated region body
PF: predicated region fallthrough
CT: control target
= control target key end

     0   :  { %s1502_s0 = inlined_call_operand.vmem [shape: bf16[512,128], index: 0, kind: input, shape index: {}]   ;;  %s1503_s1 = inlined_call_operand.vmem [shape: f32[1,128], index: 1, kind: input, shape index: {}]   ;;  %s1504_s2 = inlined_call_operand.vmem [shape: f32[1,128], index: 2, kind: input, shape index: {}]   ;;  %s1505_s3 = inlined_call_operand.vmem [shape: bf16[512,128], index: 3, kind: output, shape index: {}]  }
   0x1   :  { %v803_v0 = vld [vmem:[%s1502_s0] sm:$0xff]   ;;  %v1090_v4 = vld [vmem:[%s1502_s0 + $0x8] sm:$0xff]   ;;  %v1091_v5 = vld [vmem:[%s1502_s0 + $0x10] sm:$0xff]  }
   0x2   :  { %v1178_v1 = vld [vmem:[%s1503_s1] ss:$0 sm:$0xff]  ;;  %v804_v2 = vunpack.c.l.bf16 %v803_v0  ;;  %v805_v3 = vunpack.c.h.bf16 %v803_v0  ;;  %v1092_v6 = vld [vmem:[%s1502_s0 + $0x18] sm:$0xff]   ;;  %v808_v8 = vunpack.c.l.bf16 %v1090_v4  ;;  %v809_v9 = vunpack.c.h.bf16 %v1090_v4  ;;  %v1094_v33 = vld [vmem:[%s1502_s0 + $0x28] sm:$0xff]  }
   0x3   :  { %v1192_v7 = vld [vmem:[%s1504_s2] ss:$0 sm:$0xff]  ;;  %v812_v10 = vunpack.c.l.bf16 %v1091_v5  ;;  %v813_v11 = vunpack.c.h.bf16 %v1091_v5  ;;  %v816_v14 = vunpack.c.l.bf16 %v1092_v6  ;;  %v817_v15 = vunpack.c.h.bf16 %v1092_v6  ;;  %v1095_v38 = vld [vmem:[%s1502_s0 + $0x30] sm:$0xff]   ;;  %v1096_v43 = vld [vmem:[%s1502_s0 + $0x38] sm:$0xff]  }
   0x4   :  { %v149_v12 = vmul.f32 %v804_v2, %v1178_v1  ;;  %v150_v13 = vmul.f32 %v805_v3, %v1178_v1  ;;  %v151_v16 = vmul.f32 %v808_v8, %v1178_v1  ;;  %v152_v17 = vmul.f32 %v809_v9, %v1178_v1  ;;  %v1093_v28 = vld [vmem:[%s1502_s0 + $0x20] sm:$0xff]  }
   0x5   :  { %v153_v18 = vmul.f32 %v812_v10, %v1178_v1  ;;  %v154_v19 = vmul.f32 %v813_v11, %v1178_v1  ;;  %v155_v22 = vmul.f32 %v816_v14, %v1178_v1  ;;  %v156_v23 = vmul.f32 %v817_v15, %v1178_v1  ;;  %v1097_v0 = vld [vmem:[%s1502_s0 + $0x40] sm:$0xff]   ;;  %v1098_v11 = vld [vmem:[%s1502_s0 + $0x48] sm:$0xff]  }
   0x6   :  { %v220_v20 = vadd.f32 %v1192_v7, %v149_v12  ;;  %v221_v21 = vadd.f32 %v1192_v7, %v150_v13  ;;  %v222_v24 = vadd.f32 %v1192_v7, %v151_v16  ;;  %v223_v25 = vadd.f32 %v1192_v7, %v152_v17  ;;  %v1099_v16 = vld [vmem:[%s1502_s0 + $0x50] sm:$0xff]  }
   0x7   :  { %v224_v26 = vadd.f32 %v1192_v7, %v153_v18  ;;  %v225_v27 = vadd.f32 %v1192_v7, %v154_v19  ;;  %v226_v31 = vadd.f32 %v1192_v7, %v155_v22  ;;  %v227_v32 = vadd.f32 %v1192_v7, %v156_v23 }
   0x8   :  { %v284_v29 = vmax.f32 %v220_v20, 0.0  ;;  %v285_v30 = vmax.f32 %v221_v21, 0.0  ;;  %v286_v34 = vmax.f32 %v222_v24, 0.0  ;;  %v287_v35 = vmax.f32 %v223_v25, 0.0  ;;  %v1100_v25 = vld [vmem:[%s1502_s0 + $0x58] sm:$0xff]  }
   0x9   :  { %v288_v36 = vmax.f32 %v224_v26, 0.0  ;;  %v289_v37 = vmax.f32 %v225_v27, 0.0  ;;  %v290_v40 = vmax.f32 %v226_v31, 0.0  ;;  %v291_v41 = vmax.f32 %v227_v32, 0.0 }
   0xa   :  { %v933_v39 = vpack.c.bf16 %v285_v30, %v284_v29  ;;  %v820_v42 = vunpack.c.l.bf16 %v1093_v28  ;;  %v938_v44 = vpack.c.bf16 %v287_v35, %v286_v34  ;;  %v821_v46 = vunpack.c.h.bf16 %v1093_v28 }
   0xb   :  { %v943_v45 = vpack.c.bf16 %v289_v37, %v288_v36  ;;  %v824_v47 = vunpack.c.l.bf16 %v1094_v33  ;;  %v948_v48 = vpack.c.bf16 %v291_v41, %v290_v40  ;;  %v825_v50 = vunpack.c.h.bf16 %v1094_v33 }
   0xc   :  { %934 = vst [vmem:[%s1505_s3] sm:$0xff] %v933_v39   ;;  %v157_v49 = vmul.f32 %v820_v42, %v1178_v1  ;;  %v828_v51 = vunpack.c.l.bf16 %v1095_v38  ;;  %1121 = vst [vmem:[%s1505_s3 + $0x8] sm:$0xff] %v938_v44   ;;  %v158_v52 = vmul.f32 %v821_v46, %v1178_v1  ;;  %v829_v54 = vunpack.c.h.bf16 %v1095_v38  ;;  %v1101_v38 = vld [vmem:[%s1502_s0 + $0x60] sm:$0xff]  }
   0xd   :  { %1122 = vst [vmem:[%s1505_s3 + $0x10] sm:$0xff] %v943_v45   ;;  %v159_v53 = vmul.f32 %v824_v47, %v1178_v1  ;;  %v832_v55 = vunpack.c.l.bf16 %v1096_v43  ;;  %1123 = vst [vmem:[%s1505_s3 + $0x18] sm:$0xff] %v948_v48   ;;  %v160_v57 = vmul.f32 %v825_v50, %v1178_v1  ;;  %v833_v59 = vunpack.c.h.bf16 %v1096_v43 }
   0xe   :  { %v228_v56 = vadd.f32 %v1192_v7, %v157_v49  ;;  %v161_v58 = vmul.f32 %v828_v51, %v1178_v1  ;;  %v229_v60 = vadd.f32 %v1192_v7, %v158_v52  ;;  %v162_v62 = vmul.f32 %v829_v54, %v1178_v1  ;;  %v1102_v51 = vld [vmem:[%s1502_s0 + $0x68] sm:$0xff]  }
   0xf   :  { %v230_v61 = vadd.f32 %v1192_v7, %v159_v53  ;;  %v163_v63 = vmul.f32 %v832_v55, %v1178_v1  ;;  %v231_v3 = vadd.f32 %v1192_v7, %v160_v57  ;;  %v164_v5 = vmul.f32 %v833_v59, %v1178_v1 }
  0x10   :  { %v292_v2 = vmax.f32 %v228_v56, 0.0  ;;  %v232_v4 = vadd.f32 %v1192_v7, %v161_v58  ;;  %v293_v6 = vmax.f32 %v229_v60, 0.0  ;;  %v233_v9 = vadd.f32 %v1192_v7, %v162_v62  ;;  %v1103_v60 = vld [vmem:[%s1502_s0 + $0x70] sm:$0xff]  }
  0x11   :  { %v294_v8 = vmax.f32 %v230_v61, 0.0  ;;  %v234_v10 = vadd.f32 %v1192_v7, %v163_v63  ;;  %v295_v12 = vmax.f32 %v231_v3, 0.0  ;;  %v235_v14 = vadd.f32 %v1192_v7, %v164_v5 }
  0x12   :  { %v296_v13 = vmax.f32 %v232_v4, 0.0  ;;  %v836_v15 = vunpack.c.l.bf16 %v1097_v0  ;;  %v953_v17 = vpack.c.bf16 %v293_v6, %v292_v2  ;;  %v297_v18 = vmax.f32 %v233_v9, 0.0  ;;  %v1104_v2 = vld [vmem:[%s1502_s0 + $0x78] sm:$0xff]  }
  0x13   :  { %v298_v19 = vmax.f32 %v234_v10, 0.0  ;;  %v837_v20 = vunpack.c.h.bf16 %v1097_v0  ;;  %v958_v21 = vpack.c.bf16 %v295_v12, %v294_v8  ;;  %v299_v22 = vmax.f32 %v235_v14, 0.0  ;;  %v1105_v12 = vld [vmem:[%s1502_s0 + $0x80] sm:$0xff]  }
  0x14   :  { %v165_v23 = vmul.f32 %v836_v15, %v1178_v1  ;;  %v840_v24 = vunpack.c.l.bf16 %v1098_v11  ;;  %1124 = vst [vmem:[%s1505_s3 + $0x20] sm:$0xff] %v953_v17   ;;  %v963_v26 = vpack.c.bf16 %v297_v18, %v296_v13  ;;  %v841_v28 = vunpack.c.h.bf16 %v1098_v11 }
  0x15   :  { %v166_v27 = vmul.f32 %v837_v20, %v1178_v1  ;;  %v844_v29 = vunpack.c.l.bf16 %v1099_v16  ;;  %1125 = vst [vmem:[%s1505_s3 + $0x28] sm:$0xff] %v958_v21   ;;  %v968_v30 = vpack.c.bf16 %v299_v22, %v298_v19  ;;  %v845_v33 = vunpack.c.h.bf16 %v1099_v16 }
  0x16   :  { %v236_v31 = vadd.f32 %v1192_v7, %v165_v23  ;;  %v167_v32 = vmul.f32 %v840_v24, %v1178_v1  ;;  %1126 = vst [vmem:[%s1505_s3 + $0x30] sm:$0xff] %v963_v26   ;;  %v168_v35 = vmul.f32 %v841_v28, %v1178_v1  ;;  %v848_v37 = vunpack.c.l.bf16 %v1100_v25 }
  0x17   :  { %v237_v34 = vadd.f32 %v1192_v7, %v166_v27  ;;  %v169_v36 = vmul.f32 %v844_v29, %v1178_v1  ;;  %1127 = vst [vmem:[%s1505_s3 + $0x38] sm:$0xff] %v968_v30   ;;  %v170_v41 = vmul.f32 %v845_v33, %v1178_v1  ;;  %v849_v42 = vunpack.c.h.bf16 %v1100_v25  ;;  %v1106_v29 = vld [vmem:[%s1502_s0 + $0x88] sm:$0xff]  }
  0x18   :  { %v300_v39 = vmax.f32 %v236_v31, 0.0  ;;  %v238_v40 = vadd.f32 %v1192_v7, %v167_v32  ;;  %v239_v44 = vadd.f32 %v1192_v7, %v168_v35  ;;  %v171_v46 = vmul.f32 %v848_v37, %v1178_v1 }
  0x19   :  { %v301_v43 = vmax.f32 %v237_v34, 0.0  ;;  %v240_v45 = vadd.f32 %v1192_v7, %v169_v36  ;;  %v241_v48 = vadd.f32 %v1192_v7, %v170_v41  ;;  %v172_v49 = vmul.f32 %v849_v42, %v1178_v1  ;;  %v1107_v34 = vld [vmem:[%s1502_s0 + $0x90] sm:$0xff]  }
  0x1a   :  { %v302_v47 = vmax.f32 %v238_v40, 0.0  ;;  %v852_v50 = vunpack.c.l.bf16 %v1101_v38  ;;  %v303_v53 = vmax.f32 %v239_v44, 0.0  ;;  %v242_v55 = vadd.f32 %v1192_v7, %v171_v46 }
  0x1b   :  { %v973_v52 = vpack.c.bf16 %v301_v43, %v300_v39  ;;  %v304_v54 = vmax.f32 %v240_v45, 0.0  ;;  %v305_v56 = vmax.f32 %v241_v48, 0.0  ;;  %v243_v57 = vadd.f32 %v1192_v7, %v172_v49  ;;  %v1108_v43 = vld [vmem:[%s1502_s0 + $0x98] sm:$0xff]  }
  0x1c   :  { %v853_v58 = vunpack.c.h.bf16 %v1101_v38  ;;  %v173_v59 = vmul.f32 %v852_v50, %v1178_v1  ;;  %v978_v61 = vpack.c.bf16 %v303_v53, %v302_v47  ;;  %v306_v62 = vmax.f32 %v242_v55, 0.0 }
  0x1d   :  { %1128 = vst [vmem:[%s1505_s3 + $0x40] sm:$0xff] %v973_v52   ;;  %v856_v63 = vunpack.c.l.bf16 %v1102_v51  ;;  %v857_v0 = vunpack.c.h.bf16 %v1102_v51  ;;  %v983_v3 = vpack.c.bf16 %v305_v56, %v304_v54  ;;  %v307_v4 = vmax.f32 %v243_v57, 0.0  ;;  %v1109_v56 = vld [vmem:[%s1502_s0 + $0xa0] sm:$0xff]  }
  0x1e   :  { %v174_v5 = vmul.f32 %v853_v58, %v1178_v1  ;;  %v244_v6 = vadd.f32 %v1192_v7, %v173_v59  ;;  %1129 = vst [vmem:[%s1505_s3 + $0x48] sm:$0xff] %v978_v61   ;;  %v860_v10 = vunpack.c.l.bf16 %v1103_v60  ;;  %v861_v11 = vunpack.c.h.bf16 %v1103_v60 }
  0x1f   :  { %v175_v8 = vmul.f32 %v856_v63, %v1178_v1  ;;  %v176_v9 = vmul.f32 %v857_v0, %v1178_v1  ;;  %1130 = vst [vmem:[%s1505_s3 + $0x50] sm:$0xff] %v983_v3   ;;  %v988_v13 = vpack.c.bf16 %v307_v4, %v306_v62  ;;  %v864_v16 = vunpack.c.l.bf16 %v1104_v2 }
  0x20   :  { %v245_v14 = vadd.f32 %v1192_v7, %v174_v5  ;;  %v308_v15 = vmax.f32 %v244_v6, 0.0  ;;  %v177_v19 = vmul.f32 %v860_v10, %v1178_v1  ;;  %v178_v20 = vmul.f32 %v861_v11, %v1178_v1 }
  0x21   :  { %v246_v17 = vadd.f32 %v1192_v7, %v175_v8  ;;  %v247_v18 = vadd.f32 %v1192_v7, %v176_v9  ;;  %1131 = vst [vmem:[%s1505_s3 + $0x58] sm:$0xff] %v988_v13   ;;  %v865_v22 = vunpack.c.h.bf16 %v1104_v2  ;;  %v179_v23 = vmul.f32 %v864_v16, %v1178_v1  ;;  %v1110_v2 = vld [vmem:[%s1502_s0 + $0xa8] sm:$0xff]   ;;  %v1111_v16 = vld [vmem:[%s1502_s0 + $0xb0] sm:$0xff]  }
  0x22   :  { %v309_v21 = vmax.f32 %v245_v14, 0.0  ;;  %v868_v24 = vunpack.c.l.bf16 %v1105_v12  ;;  %v248_v27 = vadd.f32 %v1192_v7, %v177_v19  ;;  %v249_v28 = vadd.f32 %v1192_v7, %v178_v20 }
  0x23   :  { %v310_v25 = vmax.f32 %v246_v17, 0.0  ;;  %v311_v26 = vmax.f32 %v247_v18, 0.0  ;;  %v180_v31 = vmul.f32 %v865_v22, %v1178_v1  ;;  %v250_v32 = vadd.f32 %v1192_v7, %v179_v23 }
  0x24   :  { %v993_v30 = vpack.c.bf16 %v309_v21, %v308_v15  ;;  %v869_v33 = vunpack.c.h.bf16 %v1105_v12  ;;  %v312_v36 = vmax.f32 %v248_v27, 0.0  ;;  %v313_v37 = vmax.f32 %v249_v28, 0.0  ;;  %v1112_v21 = vld [vmem:[%s1502_s0 + $0xb8] sm:$0xff]  }
  0x25   :  { %v998_v35 = vpack.c.bf16 %v311_v26, %v310_v25  ;;  %v181_v38 = vmul.f32 %v868_v24, %v1178_v1  ;;  %v251_v39 = vadd.f32 %v1192_v7, %v180_v31  ;;  %v314_v40 = vmax.f32 %v250_v32, 0.0 }
  0x26   :  { %1132 = vst [vmem:[%s1505_s3 + $0x60] sm:$0xff] %v993_v30   ;;  %v182_v41 = vmul.f32 %v869_v33, %v1178_v1  ;;  %v872_v42 = vunpack.c.l.bf16 %v1106_v29  ;;  %v1003_v44 = vpack.c.bf16 %v313_v37, %v312_v36  ;;  %v873_v46 = vunpack.c.h.bf16 %v1106_v29 }
  0x27   :  { %1133 = vst [vmem:[%s1505_s3 + $0x68] sm:$0xff] %v998_v35   ;;  %v252_v45 = vadd.f32 %v1192_v7, %v181_v38  ;;  %v876_v47 = vunpack.c.l.bf16 %v1107_v34  ;;  %v315_v48 = vmax.f32 %v251_v39, 0.0  ;;  %v877_v51 = vunpack.c.h.bf16 %v1107_v34  ;;  %v1113_v34 = vld [vmem:[%s1502_s0 + $0xc0] sm:$0xff]  }
  0x28   :  { %v253_v49 = vadd.f32 %v1192_v7, %v182_v41  ;;  %v183_v50 = vmul.f32 %v872_v42, %v1178_v1  ;;  %1134 = vst [vmem:[%s1505_s3 + $0x70] sm:$0xff] %v1003_v44   ;;  %v184_v53 = vmul.f32 %v873_v46, %v1178_v1  ;;  %v880_v55 = vunpack.c.l.bf16 %v1108_v43 }
  0x29   :  { %v316_v52 = vmax.f32 %v252_v45, 0.0  ;;  %v185_v54 = vmul.f32 %v876_v47, %v1178_v1  ;;  %v1008_v57 = vpack.c.bf16 %v315_v48, %v314_v40  ;;  %v186_v60 = vmul.f32 %v877_v51, %v1178_v1  ;;  %v1114_v47 = vld [vmem:[%s1502_s0 + $0xc8] sm:$0xff]  }
  0x2a   :  { %v317_v58 = vmax.f32 %v253_v49, 0.0  ;;  %v254_v59 = vadd.f32 %v1192_v7, %v183_v50  ;;  %v255_v61 = vadd.f32 %v1192_v7, %v184_v53  ;;  %v881_v63 = vunpack.c.h.bf16 %v1108_v43 }
  0x2b   :  { %v256_v62 = vadd.f32 %v1192_v7, %v185_v54  ;;  %v187_v0 = vmul.f32 %v880_v55, %v1178_v1  ;;  %1135 = vst [vmem:[%s1505_s3 + $0x78] sm:$0xff] %v1008_v57   ;;  %v257_v5 = vadd.f32 %v1192_v7, %v186_v60  ;;  %v884_v6 = vunpack.c.l.bf16 %v1109_v56 }
  0x2c   :  { %v1013_v3 = vpack.c.bf16 %v317_v58, %v316_v52  ;;  %v318_v4 = vmax.f32 %v254_v59, 0.0  ;;  %v319_v8 = vmax.f32 %v255_v61, 0.0  ;;  %v188_v10 = vmul.f32 %v881_v63, %v1178_v1  ;;  %v1115_v52 = vld [vmem:[%s1502_s0 + $0xd0] sm:$0xff]   ;;  %v1116_v61 = vld [vmem:[%s1502_s0 + $0xd8] sm:$0xff]  }
  0x2d   :  { %v320_v9 = vmax.f32 %v256_v62, 0.0  ;;  %v258_v11 = vadd.f32 %v1192_v7, %v187_v0  ;;  %v321_v12 = vmax.f32 %v257_v5, 0.0  ;;  %v885_v13 = vunpack.c.h.bf16 %v1109_v56 }
  0x2e   :  { %1136 = vst [vmem:[%s1505_s3 + $0x80] sm:$0xff] %v1013_v3   ;;  %v189_v14 = vmul.f32 %v884_v6, %v1178_v1  ;;  %v888_v15 = vunpack.c.l.bf16 %v1110_v2  ;;  %v1018_v17 = vpack.c.bf16 %v319_v8, %v318_v4  ;;  %v259_v18 = vadd.f32 %v1192_v7, %v188_v10 }
  0x2f   :  { %v322_v19 = vmax.f32 %v258_v11, 0.0  ;;  %v889_v20 = vunpack.c.h.bf16 %v1110_v2  ;;  %v1023_v22 = vpack.c.bf16 %v321_v12, %v320_v9  ;;  %v190_v23 = vmul.f32 %v885_v13, %v1178_v1  ;;  %v1117_v12 = vld [vmem:[%s1502_s0 + $0xe0] sm:$0xff]  }
  0x30   :  { %v260_v24 = vadd.f32 %v1192_v7, %v189_v14  ;;  %v191_v25 = vmul.f32 %v888_v15, %v1178_v1  ;;  %1137 = vst [vmem:[%s1505_s3 + $0x88] sm:$0xff] %v1018_v17   ;;  %v323_v26 = vmax.f32 %v259_v18, 0.0  ;;  %v892_v28 = vunpack.c.l.bf16 %v1111_v16 }
  0x31   :  { %v192_v27 = vmul.f32 %v889_v20, %v1178_v1  ;;  %v893_v29 = vunpack.c.h.bf16 %v1111_v16  ;;  %1138 = vst [vmem:[%s1505_s3 + $0x90] sm:$0xff] %v1023_v22   ;;  %v261_v30 = vadd.f32 %v1192_v7, %v190_v23  ;;  %v896_v33 = vunpack.c.l.bf16 %v1112_v21 }
  0x32   :  { %v324_v31 = vmax.f32 %v260_v24, 0.0  ;;  %v262_v32 = vadd.f32 %v1192_v7, %v191_v25  ;;  %v1028_v35 = vpack.c.bf16 %v323_v26, %v322_v19  ;;  %v193_v37 = vmul.f32 %v892_v28, %v1178_v1 }
  0x33   :  { %v263_v36 = vadd.f32 %v1192_v7, %v192_v27  ;;  %v194_v38 = vmul.f32 %v893_v29, %v1178_v1  ;;  %v325_v39 = vmax.f32 %v261_v30, 0.0  ;;  %v897_v41 = vunpack.c.h.bf16 %v1112_v21  ;;  %v1118_v21 = vld [vmem:[%s1502_s0 + $0xe8] sm:$0xff]  }
  0x34   :  { %v326_v40 = vmax.f32 %v262_v32, 0.0  ;;  %v195_v42 = vmul.f32 %v896_v33, %v1178_v1  ;;  %1139 = vst [vmem:[%s1505_s3 + $0x98] sm:$0xff] %v1028_v35   ;;  %v264_v44 = vadd.f32 %v1192_v7, %v193_v37  ;;  %v900_v46 = vunpack.c.l.bf16 %v1113_v34 }
  0x35   :  { %v327_v43 = vmax.f32 %v263_v36, 0.0  ;;  %v265_v45 = vadd.f32 %v1192_v7, %v194_v38  ;;  %v1033_v48 = vpack.c.bf16 %v325_v39, %v324_v31  ;;  %v196_v49 = vmul.f32 %v897_v41, %v1178_v1  ;;  %v1120_v39 = vld [vmem:[%s1502_s0 + $0xf8] sm:$0xff]  }
  0x36   :  { %v266_v50 = vadd.f32 %v1192_v7, %v195_v42  ;;  %v901_v51 = vunpack.c.h.bf16 %v1113_v34  ;;  %v328_v54 = vmax.f32 %v264_v44, 0.0  ;;  %v197_v56 = vmul.f32 %v900_v46, %v1178_v1  ;;  %v1119_v34 = vld [vmem:[%s1502_s0 + $0xf0] sm:$0xff]  }
  0x37   :  { %v1038_v53 = vpack.c.bf16 %v327_v43, %v326_v40  ;;  %v329_v55 = vmax.f32 %v265_v45, 0.0  ;;  %1140 = vst [vmem:[%s1505_s3 + $0xa0] sm:$0xff] %v1033_v48   ;;  %v267_v57 = vadd.f32 %v1192_v7, %v196_v49  ;;  %v904_v60 = vunpack.c.l.bf16 %v1114_v47 }
  0x38   :  { %v330_v58 = vmax.f32 %v266_v50, 0.0  ;;  %v198_v59 = vmul.f32 %v901_v51, %v1178_v1  ;;  %v268_v63 = vadd.f32 %v1192_v7, %v197_v56  ;;  %v905_v0 = vunpack.c.h.bf16 %v1114_v47 }
  0x39   :  { %1141 = vst [vmem:[%s1505_s3 + $0xa8] sm:$0xff] %v1038_v53   ;;  %v1043_v62 = vpack.c.bf16 %v329_v55, %v328_v54  ;;  %v908_v2 = vunpack.c.l.bf16 %v1115_v52  ;;  %v331_v3 = vmax.f32 %v267_v57, 0.0  ;;  %v199_v5 = vmul.f32 %v904_v60, %v1178_v1 }
  0x3a   :  { %v269_v4 = vadd.f32 %v1192_v7, %v198_v59  ;;  %v909_v6 = vunpack.c.h.bf16 %v1115_v52  ;;  %v332_v8 = vmax.f32 %v268_v63, 0.0  ;;  %v200_v9 = vmul.f32 %v905_v0, %v1178_v1 }
  0x3b   :  { %1142 = vst [vmem:[%s1505_s3 + $0xb0] sm:$0xff] %v1043_v62   ;;  %v201_v10 = vmul.f32 %v908_v2, %v1178_v1  ;;  %v912_v11 = vunpack.c.l.bf16 %v1116_v61  ;;  %v1048_v13 = vpack.c.bf16 %v331_v3, %v330_v58  ;;  %v270_v15 = vadd.f32 %v1192_v7, %v199_v5 }
  0x3c   :  { %v333_v14 = vmax.f32 %v269_v4, 0.0  ;;  %v202_v16 = vmul.f32 %v909_v6, %v1178_v1  ;;  %v271_v17 = vadd.f32 %v1192_v7, %v200_v9  ;;  %v913_v19 = vunpack.c.h.bf16 %v1116_v61 }
  0x3d   :  { %v272_v18 = vadd.f32 %v1192_v7, %v201_v10  ;;  %v203_v20 = vmul.f32 %v912_v11, %v1178_v1  ;;  %1143 = vst [vmem:[%s1505_s3 + $0xb8] sm:$0xff] %v1048_v13   ;;  %v334_v23 = vmax.f32 %v270_v15, 0.0  ;;  %v916_v25 = vunpack.c.l.bf16 %v1117_v12 }
  0x3e   :  { %v1053_v22 = vpack.c.bf16 %v333_v14, %v332_v8  ;;  %v273_v24 = vadd.f32 %v1192_v7, %v202_v16  ;;  %v335_v26 = vmax.f32 %v271_v17, 0.0  ;;  %v204_v28 = vmul.f32 %v913_v19, %v1178_v1 }
  0x3f   :  { %v336_v27 = vmax.f32 %v272_v18, 0.0  ;;  %v274_v29 = vadd.f32 %v1192_v7, %v203_v20  ;;  %v917_v31 = vunpack.c.h.bf16 %v1117_v12  ;;  %v205_v32 = vmul.f32 %v916_v25, %v1178_v1 }
  0x40   :  { %1144 = vst [vmem:[%s1505_s3 + $0xc0] sm:$0xff] %v1053_v22   ;;  %v337_v30 = vmax.f32 %v273_v24, 0.0  ;;  %v920_v33 = vunpack.c.l.bf16 %v1118_v21  ;;  %v1058_v35 = vpack.c.bf16 %v335_v26, %v334_v23  ;;  %v275_v36 = vadd.f32 %v1192_v7, %v204_v28 }
  0x41   :  { %v338_v37 = vmax.f32 %v274_v29, 0.0  ;;  %v921_v38 = vunpack.c.h.bf16 %v1118_v21  ;;  %v206_v41 = vmul.f32 %v917_v31, %v1178_v1  ;;  %v276_v42 = vadd.f32 %v1192_v7, %v205_v32 }
  0x42   :  { %v1063_v40 = vpack.c.bf16 %v337_v30, %v336_v27  ;;  %v207_v43 = vmul.f32 %v920_v33, %v1178_v1  ;;  %1145 = vst [vmem:[%s1505_s3 + $0xc8] sm:$0xff] %v1058_v35   ;;  %v339_v44 = vmax.f32 %v275_v36, 0.0  ;;  %v924_v46 = vunpack.c.l.bf16 %v1119_v34 }
  0x43   :  { %v208_v45 = vmul.f32 %v921_v38, %v1178_v1  ;;  %v925_v47 = vunpack.c.h.bf16 %v1119_v34  ;;  %v277_v48 = vadd.f32 %v1192_v7, %v206_v41  ;;  %v340_v49 = vmax.f32 %v276_v42, 0.0 }
  0x44   :  { %1146 = vst [vmem:[%s1505_s3 + $0xd0] sm:$0xff] %v1063_v40   ;;  %v278_v50 = vadd.f32 %v1192_v7, %v207_v43  ;;  %v928_v51 = vunpack.c.l.bf16 %v1120_v39  ;;  %v1068_v52 = vpack.c.bf16 %v339_v44, %v338_v37  ;;  %v209_v54 = vmul.f32 %v924_v46, %v1178_v1 }
  0x45   :  { %v279_v53 = vadd.f32 %v1192_v7, %v208_v45  ;;  %v210_v55 = vmul.f32 %v925_v47, %v1178_v1  ;;  %v341_v56 = vmax.f32 %v277_v48, 0.0  ;;  %v929_v58 = vunpack.c.h.bf16 %v1120_v39 }
  0x46   :  { %v342_v57 = vmax.f32 %v278_v50, 0.0  ;;  %v211_v59 = vmul.f32 %v928_v51, %v1178_v1  ;;  %1147 = vst [vmem:[%s1505_s3 + $0xd8] sm:$0xff] %v1068_v52   ;;  %v280_v61 = vadd.f32 %v1192_v7, %v209_v54 }
  0x47   :  { %v343_v60 = vmax.f32 %v279_v53, 0.0  ;;  %v281_v62 = vadd.f32 %v1192_v7, %v210_v55  ;;  %v1073_v63 = vpack.c.bf16 %v341_v56, %v340_v49  ;;  %v212_v0 = vmul.f32 %v929_v58, %v1178_v1 }
  0x48   :  { %v282_v2 = vadd.f32 %v1192_v7, %v211_v59  ;;  %v344_v4 = vmax.f32 %v280_v61, 0.0 }
  0x49   :  { %v1078_v3 = vpack.c.bf16 %v343_v60, %v342_v57  ;;  %v345_v5 = vmax.f32 %v281_v62, 0.0  ;;  %1148 = vst [vmem:[%s1505_s3 + $0xe0] sm:$0xff] %v1073_v63   ;;  %v283_v6 = vadd.f32 %v1192_v7, %v212_v0 }
  0x4a   :  { %v346_v8 = vmax.f32 %v282_v2, 0.0 }
  0x4b   :  { %1149 = vst [vmem:[%s1505_s3 + $0xe8] sm:$0xff] %v1078_v3   ;;  %v1083_v9 = vpack.c.bf16 %v345_v5, %v344_v4  ;;  %v347_v10 = vmax.f32 %v283_v6, 0.0 }
  0x4d   :  { %1150 = vst [vmem:[%s1505_s3 + $0xf0] sm:$0xff] %v1083_v9   ;;  %v1088_v1 = vpack.c.bf16 %v347_v10, %v346_v8 }
  0x4f   :  { %1151 = vst [vmem:[%s1505_s3 + $0xf8] sm:$0xff] %v1088_v1  }

// kernel: dense_block_forward.9
= control target key start
LH: loop header
LB: loop body
LE: loop exit
PB: predicated region body
PF: predicated region fallthrough
CT: control target
= control target key end

     0   :  { %vm246_vm0 = vcmask 130048   ;;  %vm1154_vm1 = vcmask 1040384   ;;  %s2125_s1 = inlined_call_operand.vmem [shape: bf16[16,128], index: 1, kind: input, shape index: {}]   ;;  %s2126_s0 = inlined_call_operand.vmem [shape: bf16[512,16], index: 0, kind: input, shape index: {}]   ;;  %s2127_s2 = inlined_call_operand.vmem [shape: bf16[512,128], index: 2, kind: output, shape index: {0}]   ;;  %s2128_s3 = inlined_call_operand.vmem [shape: f32[1,2,128], index: 3, kind: output, shape index: {1}]  }
   0x1   :  { %v1650_v0 = vld [vmem:[%s2125_s1] sm:$0xff]   ;;  %v1652_v2 = vld [vmem:[%s2126_s0 + $0x8] sm:$0xff]   ;;  %v1653_v3 = vld [vmem:[%s2126_s0 + $0x10] sm:$0xff]  }
   0x2   :  { %v1651_v1 = vld [vmem:[%s2126_s0] sm:$0xff]   ;;  %1582 = vmatprep.subr.bf16.mxu0 %v1650_v0  ;;  %1648 = vmatprep.subr.bf16.mxu1 %v1650_v0  ;;  %v1654_v4 = vld [vmem:[%s2126_s0 + $0x18] sm:$0xff]   ;;  %v1656_v6 = vld [vmem:[%s2126_s0 + $0x28] sm:$0xff]  }
   0x3   :  { %1583 = vmatpush3.bf16.msra.mxu0 %v1650_v0  ;;  %1584 = vmatprep.mubr.msk.bf16.mxu0 %vm246_vm0, %v1651_v1  ;;  %v1655_v5 = vld [vmem:[%s2126_s0 + $0x20] sm:$0xff]   ;;  %v1657_v7 = vld [vmem:[%s2126_s0 + $0x30] sm:$0xff]   ;;  %v1668_v9 = vld [vmem:[%s2126_s0 + $0x88] sm:$0xff]  }
   0x4   :  { %1649 = vmatpush3.bf16.msra.mxu1 %v1650_v0  ;;  %v1667_v8 = vld [vmem:[%s2126_s0 + $0x80] sm:$0xff]   ;;  %v1669_v10 = vld [vmem:[%s2126_s0 + $0x90] sm:$0xff]   ;;  %v1670_v11 = vld [vmem:[%s2126_s0 + $0x98] sm:$0xff]  }
   0x5   :  { %1616 = vmatprep.mubr.msk.bf16.mxu1 %vm246_vm0, %v1667_v8  ;;  %v1671_v12 = vld [vmem:[%s2126_s0 + $0xa0] sm:$0xff]   ;;  %v1658_v13 = vld [vmem:[%s2126_s0 + $0x38] sm:$0xff]   ;;  %v1672_v15 = vld [vmem:[%s2126_s0 + $0xa8] sm:$0xff]  }
   0x6   :  { %1585 = vmatmul.mubr.msk.bf16.vlgmr.msra.gmra.mrb[0].mxu0 %vm246_vm0, %v1652_v2  ;;  %v1659_v14 = vld [vmem:[%s2126_s0 + $0x40] sm:$0xff]   ;;  %v1673_v16 = vld [vmem:[%s2126_s0 + $0xb0] sm:$0xff]   ;;  %v1660_v17 = vld [vmem:[%s2126_s0 + $0x48] sm:$0xff]  }
   0x7   :  { %1588 = vmatprep.mubr.msk.bf16.mxu0 %vm246_vm0, %v1653_v3  ;;  %1617 = vmatmul.mubr.msk.bf16.vlgmr.msra.gmra.mrb[0].mxu1 %vm246_vm0, %v1668_v9  ;;  %v1661_v18 = vld [vmem:[%s2126_s0 + $0x50] sm:$0xff]   ;;  %v1674_v19 = vld [vmem:[%s2126_s0 + $0xb8] sm:$0xff]   ;;  %v1675_v20 = vld [vmem:[%s2126_s0 + $0xc0] sm:$0xff]  }
   0x8   :  { %1620 = vmatprep.mubr.msk.bf16.mxu1 %vm246_vm0, %v1669_v10  ;;  %v1662_v21 = vld [vmem:[%s2126_s0 + $0x58] sm:$0xff]   ;;  %v1663_v22 = vld [vmem:[%s2126_s0 + $0x60] sm:$0xff]   ;;  %v1676_v23 = vld [vmem:[%s2126_s0 + $0xc8] sm:$0xff]  }
   0x9   :  { %v1677_v24 = vld [vmem:[%s2126_s0 + $0xd0] sm:$0xff]   ;;  %v1664_v25 = vld [vmem:[%s2126_s0 + $0x68] sm:$0xff]   ;;  %v1678_v27 = vld [vmem:[%s2126_s0 + $0xd8] sm:$0xff]  }
   0xa   :  { %v1665_v26 = vld [vmem:[%s2126_s0 + $0x70] sm:$0xff]   ;;  %v1679_v28 = vld [vmem:[%s2126_s0 + $0xe0] sm:$0xff]   ;;  %v1666_v29 = vld [vmem:[%s2126_s0 + $0x78] sm:$0xff]  }
   0xb   :  { %v1680_v30 = vld [vmem:[%s2126_s0 + $0xe8] sm:$0xff]   ;;  %v1681_v31 = vld [vmem:[%s2126_s0 + $0xf0] sm:$0xff]   ;;  %v1682_v32 = vld [vmem:[%s2126_s0 + $0xf8] sm:$0xff]  }
   0xe   :  { %1589 = vmatmul.mubr.msk.bf16.gmra.mrb[4].mxu0 %vm246_vm0, %v1654_v4 }
   0xf   :  { %1592 = vmatprep.mubr.msk.bf16.mxu0 %vm246_vm0, %v1655_v5  ;;  %1621 = vmatmul.mubr.msk.bf16.gmra.mrb[4].mxu1 %vm246_vm0, %v1670_v11 }
  0x10   :  { %1624 = vmatprep.mubr.msk.bf16.mxu1 %vm246_vm0, %v1671_v12 }
  0x16   :  { %1593 = vmatmul.mubr.msk.bf16.gmra.mrb[8].mxu0 %vm246_vm0, %v1656_v6 }
  0x17   :  { %1596 = vmatprep.mubr.msk.bf16.mxu0 %vm246_vm0, %v1657_v7  ;;  %1625 = vmatmul.mubr.msk.bf16.gmra.mrb[8].mxu1 %vm246_vm0, %v1672_v15 }
  0x18   :  { %1628 = vmatprep.mubr.msk.bf16.mxu1 %vm246_vm0, %v1673_v16 }
  0x1e   :  { %1597 = vmatmul.mubr.msk.bf16.gmra.mrb[12].mxu0 %vm246_vm0, %v1658_v13 }
  0x1f   :  { %1600 = vmatprep.mubr.msk.bf16.mxu0 %vm246_vm0, %v1659_v14  ;;  %1629 = vmatmul.mubr.msk.bf16.gmra.mrb[12].mxu1 %vm246_vm0, %v1674_v19 }
  0x20   :  { %1632 = vmatprep.mubr.msk.bf16.mxu1 %vm246_vm0, %v1675_v20 }
  0x26   :  { %1601 = vmatmul.mubr.msk.bf16.gmra.mrb[16].mxu0 %vm246_vm0, %v1660_v17 }
  0x27   :  { %1604 = vmatprep.mubr.msk.bf16.mxu0 %vm246_vm0, %v1661_v18  ;;  %1633 = vmatmul.mubr.msk.bf16.gmra.mrb[16].mxu1 %vm246_vm0, %v1676_v23 }
  0x28   :  { %1636 = vmatprep.mubr.msk.bf16.mxu1 %vm246_vm0, %v1677_v24 }
  0x2e   :  { %1605 = vmatmul.mubr.msk.bf16.gmra.mrb[20].mxu0 %vm246_vm0, %v1662_v21 }
  0x2f   :  { %1608 = vmatprep.mubr.msk.bf16.mxu0 %vm246_vm0, %v1663_v22  ;;  %1637 = vmatmul.mubr.msk.bf16.gmra.mrb[20].mxu1 %vm246_vm0, %v1678_v27 }
  0x30   :  { %1640 = vmatprep.mubr.msk.bf16.mxu1 %vm246_vm0, %v1679_v28 }
  0x36   :  { %1609 = vmatmul.mubr.msk.bf16.gmra.mrb[24].mxu0 %vm246_vm0, %v1664_v25 }
  0x37   :  { %1612 = vmatprep.mubr.msk.bf16.mxu0 %vm246_vm0, %v1665_v26  ;;  %1641 = vmatmul.mubr.msk.bf16.gmra.mrb[24].mxu1 %vm246_vm0, %v1680_v30 }
  0x38   :  { %1644 = vmatprep.mubr.msk.bf16.mxu1 %vm246_vm0, %v1681_v31 }
  0x3e   :  { %1613 = vmatmul.mubr.msk.bf16.gmra.mrb[28].mxu0 %vm246_vm0, %v1666_v29 }
  0x3f   :  { %1645 = vmatmul.mubr.msk.bf16.gmra.mrb[28].mxu1 %vm246_vm0, %v1682_v32 }
  0xd9   :  { %v1586_v33 = vpop.f32.mrb[0].mxu0 }
  0xda   :  { %v377_v34 = vpop.f32.mrb[1].mxu0  ;;  %v1023_v42 = vmul.f32 %v1586_v33, %v1586_v33  ;;  %v1846_v63 = vpop.f32.mrb[0].mxu1 }
  0xdb   :  { %v1587_v35 = vpop.f32.mrb[2].mxu0  ;;  %v1021_v38 = vmul.f32 %v377_v34, %v377_v34  ;;  %v1848_v0 = vpop.f32.mrb[1].mxu1 }
  0xdc   :  { %v1366_v36 = vpack.c.bf16 %v1587_v35, %v1586_v33  ;;  %v380_v37 = vpop.f32.mrb[3].mxu0  ;;  %v1024_v45 = vmul.f32 %v1587_v35, %v1587_v35  ;;  %v1850_v5 = vpop.f32.mrb[2].mxu1 }
  0xdd   :  { %v1361_v39 = vpack.c.bf16 %v380_v37, %v377_v34  ;;  %v952_v40 = vadd.f32 %v380_v37, %v377_v34  ;;  %v1022_v41 = vmul.f32 %v380_v37, %v380_v37  ;;  %v1446_v7 = vpack.c.bf16 %v1850_v5, %v1846_v63  ;;  %v1854_v8 = vpop.f32.mrb[3].mxu1 }
  0xde   :  { %1518 = vst [vmem:[%s2127_s2 + $0x8] sm:$0xff] %v1366_v36   ;;  %v1441_v13 = vpack.c.bf16 %v1854_v8, %v1848_v0 }
  0xdf   :  { %1362 = vst [vmem:[%s2127_s2] sm:$0xff] %v1361_v39   ;;  %v953_v43 = vadd.f32 %v1586_v33, %v952_v40  ;;  %v1085_v44 = vadd.f32 %v1022_v41, %v1021_v38  ;;  %1534 = vst [vmem:[%s2127_s2 + $0x88] sm:$0xff] %v1446_v7  }
  0xe0   :  { %1533 = vst [vmem:[%s2127_s2 + $0x80] sm:$0xff] %v1441_v13  }
  0xe1   :  { %v1086_v46 = vadd.f32 %v1085_v44, %v1023_v42  ;;  %v1590_v47 = vpop.f32.mrb[4].mxu0  ;;  %v954_v48 = vadd.f32 %v1587_v35, %v953_v43 }
  0xe2   :  { %v393_v49 = vpop.f32.mrb[5].mxu0  ;;  %v1027_v60 = vmul.f32 %v1590_v47, %v1590_v47  ;;  %v1870_v23 = vpop.f32.mrb[4].mxu1 }
  0xe3   :  { %v955_v50 = vadd.f32 %v954_v48, %v393_v49  ;;  %v1025_v51 = vmul.f32 %v393_v49, %v393_v49  ;;  %v1087_v52 = vadd.f32 %v1086_v46, %v1024_v45  ;;  %v1591_v53 = vpop.f32.mrb[6].mxu0  ;;  %v1872_v24 = vpop.f32.mrb[5].mxu1 }
  0xe4   :  { %v1376_v54 = vpack.c.bf16 %v1591_v53, %v1590_v47  ;;  %v396_v55 = vpop.f32.mrb[7].mxu0  ;;  %v1028_v1 = vmul.f32 %v1591_v53, %v1591_v53  ;;  %v1874_v29 = vpop.f32.mrb[6].mxu1 }
  0xe5   :  { %v1088_v56 = vadd.f32 %v1087_v52, %v1025_v51  ;;  %v1371_v57 = vpack.c.bf16 %v396_v55, %v393_v49  ;;  %v956_v58 = vadd.f32 %v955_v50, %v396_v55  ;;  %v1026_v59 = vmul.f32 %v396_v55, %v396_v55  ;;  %v1878_v32 = vpop.f32.mrb[7].mxu1 }
  0xe6   :  { %1520 = vst [vmem:[%s2127_s2 + $0x18] sm:$0xff] %v1376_v54   ;;  %v1456_v31 = vpack.c.bf16 %v1874_v29, %v1870_v23  ;;  %v1451_v37 = vpack.c.bf16 %v1878_v32, %v1872_v24 }
  0xe7   :  { %1519 = vst [vmem:[%s2127_s2 + $0x10] sm:$0xff] %v1371_v57   ;;  %v957_v61 = vadd.f32 %v1590_v47, %v956_v58  ;;  %v1089_v62 = vadd.f32 %v1088_v56, %v1026_v59 }
  0xe8   :  { %1536 = vst [vmem:[%s2127_s2 + $0x98] sm:$0xff] %v1456_v31   ;;  %1535 = vst [vmem:[%s2127_s2 + $0x90] sm:$0xff] %v1451_v37  }
  0xe9   :  { %v1090_v2 = vadd.f32 %v1089_v62, %v1027_v60  ;;  %v1594_v3 = vpop.f32.mrb[8].mxu0  ;;  %v958_v4 = vadd.f32 %v1591_v53, %v957_v61 }
  0xea   :  { %v409_v6 = vpop.f32.mrb[9].mxu0  ;;  %v1031_v20 = vmul.f32 %v1594_v3, %v1594_v3  ;;  %v1894_v47 = vpop.f32.mrb[8].mxu1 }
  0xeb   :  { %v959_v9 = vadd.f32 %v958_v4, %v409_v6  ;;  %v1029_v10 = vmul.f32 %v409_v6, %v409_v6  ;;  %v1091_v11 = vadd.f32 %v1090_v2, %v1028_v1  ;;  %v1595_v12 = vpop.f32.mrb[10].mxu0  ;;  %v1896_v48 = vpop.f32.mrb[9].mxu1 }
  0xec   :  { %v1386_v14 = vpack.c.bf16 %v1595_v12, %v1594_v3  ;;  %v412_v15 = vpop.f32.mrb[11].mxu0  ;;  %v1032_v25 = vmul.f32 %v1595_v12, %v1595_v12  ;;  %v1898_v53 = vpop.f32.mrb[10].mxu1 }
  0xed   :  { %v1092_v16 = vadd.f32 %v1091_v11, %v1029_v10  ;;  %v1381_v17 = vpack.c.bf16 %v412_v15, %v409_v6  ;;  %v960_v18 = vadd.f32 %v959_v9, %v412_v15  ;;  %v1030_v19 = vmul.f32 %v412_v15, %v412_v15  ;;  %v1902_v56 = vpop.f32.mrb[11].mxu1 }
  0xee   :  { %1522 = vst [vmem:[%s2127_s2 + $0x28] sm:$0xff] %v1386_v14   ;;  %v1466_v55 = vpack.c.bf16 %v1898_v53, %v1894_v47  ;;  %v1461_v61 = vpack.c.bf16 %v1902_v56, %v1896_v48 }
  0xef   :  { %1521 = vst [vmem:[%s2127_s2 + $0x20] sm:$0xff] %v1381_v17   ;;  %v961_v21 = vadd.f32 %v1594_v3, %v960_v18  ;;  %v1093_v22 = vadd.f32 %v1092_v16, %v1030_v19 }
  0xf0   :  { %1538 = vst [vmem:[%s2127_s2 + $0xa8] sm:$0xff] %v1466_v55   ;;  %1537 = vst [vmem:[%s2127_s2 + $0xa0] sm:$0xff] %v1461_v61  }
  0xf1   :  { %v1094_v26 = vadd.f32 %v1093_v22, %v1031_v20  ;;  %v1598_v27 = vpop.f32.mrb[12].mxu0  ;;  %v962_v28 = vadd.f32 %v1595_v12, %v961_v21 }
  0xf2   :  { %v425_v30 = vpop.f32.mrb[13].mxu0  ;;  %v1035_v44 = vmul.f32 %v1598_v27, %v1598_v27  ;;  %v1918_v11 = vpop.f32.mrb[12].mxu1 }
  0xf3   :  { %v963_v33 = vadd.f32 %v962_v28, %v425_v30  ;;  %v1033_v34 = vmul.f32 %v425_v30, %v425_v30  ;;  %v1095_v35 = vadd.f32 %v1094_v26, %v1032_v25  ;;  %v1599_v36 = vpop.f32.mrb[14].mxu0  ;;  %v1920_v12 = vpop.f32.mrb[13].mxu1 }
  0xf4   :  { %v1396_v38 = vpack.c.bf16 %v1599_v36, %v1598_v27  ;;  %v428_v39 = vpop.f32.mrb[15].mxu0  ;;  %v1036_v49 = vmul.f32 %v1599_v36, %v1599_v36  ;;  %v1922_v17 = vpop.f32.mrb[14].mxu1 }
  0xf5   :  { %v1096_v40 = vadd.f32 %v1095_v35, %v1033_v34  ;;  %v1391_v41 = vpack.c.bf16 %v428_v39, %v425_v30  ;;  %v964_v42 = vadd.f32 %v963_v33, %v428_v39  ;;  %v1034_v43 = vmul.f32 %v428_v39, %v428_v39  ;;  %v1926_v20 = vpop.f32.mrb[15].mxu1 }
  0xf6   :  { %1524 = vst [vmem:[%s2127_s2 + $0x38] sm:$0xff] %v1396_v38   ;;  %v1476_v19 = vpack.c.bf16 %v1922_v17, %v1918_v11 }
  0xf7   :  { %1523 = vst [vmem:[%s2127_s2 + $0x30] sm:$0xff] %v1391_v41   ;;  %v965_v45 = vadd.f32 %v1598_v27, %v964_v42  ;;  %v1097_v46 = vadd.f32 %v1096_v40, %v1034_v43  ;;  %v1471_v27 = vpack.c.bf16 %v1926_v20, %v1920_v12 }
  0xf8   :  { %1540 = vst [vmem:[%s2127_s2 + $0xb8] sm:$0xff] %v1476_v19  }
  0xf9   :  { %v1098_v50 = vadd.f32 %v1097_v46, %v1035_v44  ;;  %v1602_v51 = vpop.f32.mrb[16].mxu0  ;;  %v966_v52 = vadd.f32 %v1599_v36, %v965_v45  ;;  %1539 = vst [vmem:[%s2127_s2 + $0xb0] sm:$0xff] %v1471_v27  }
  0xfa   :  { %v441_v54 = vpop.f32.mrb[17].mxu0  ;;  %v1039_v7 = vmul.f32 %v1602_v51, %v1602_v51  ;;  %v1942_v39 = vpop.f32.mrb[16].mxu1 }
  0xfb   :  { %v967_v57 = vadd.f32 %v966_v52, %v441_v54  ;;  %v1037_v58 = vmul.f32 %v441_v54, %v441_v54  ;;  %v1099_v59 = vadd.f32 %v1098_v50, %v1036_v49  ;;  %v1603_v60 = vpop.f32.mrb[18].mxu0  ;;  %v1944_v40 = vpop.f32.mrb[17].mxu1 }
  0xfc   :  { %v1406_v62 = vpack.c.bf16 %v1603_v60, %v1602_v51  ;;  %v444_v1 = vpop.f32.mrb[19].mxu0  ;;  %v1040_v13 = vmul.f32 %v1603_v60, %v1603_v60  ;;  %v1946_v45 = vpop.f32.mrb[18].mxu1 }
  0xfd   :  { %v1100_v2 = vadd.f32 %v1099_v59, %v1037_v58  ;;  %v1401_v3 = vpack.c.bf16 %v444_v1, %v441_v54  ;;  %v968_v4 = vadd.f32 %v967_v57, %v444_v1  ;;  %v1038_v6 = vmul.f32 %v444_v1, %v444_v1  ;;  %v1950_v50 = vpop.f32.mrb[19].mxu1 }
  0xfe   :  { %1526 = vst [vmem:[%s2127_s2 + $0x48] sm:$0xff] %v1406_v62   ;;  %v1486_v49 = vpack.c.bf16 %v1946_v45, %v1942_v39  ;;  %v1481_v57 = vpack.c.bf16 %v1950_v50, %v1944_v40 }
  0xff   :  { %1525 = vst [vmem:[%s2127_s2 + $0x40] sm:$0xff] %v1401_v3   ;;  %v969_v9 = vadd.f32 %v1602_v51, %v968_v4  ;;  %v1101_v10 = vadd.f32 %v1100_v2, %v1038_v6 }
 0x100   :  { %1542 = vst [vmem:[%s2127_s2 + $0xc8] sm:$0xff] %v1486_v49   ;;  %1541 = vst [vmem:[%s2127_s2 + $0xc0] sm:$0xff] %v1481_v57   ;;  %v1053_v49 = vmul.f32 %v1848_v0, %v1848_v0 }
 0x101   :  { %v1102_v14 = vadd.f32 %v1101_v10, %v1039_v7  ;;  %v1606_v15 = vpop.f32.mrb[20].mxu0  ;;  %v970_v16 = vadd.f32 %v1603_v60, %v969_v9 }
 0x102   :  { %v457_v18 = vpop.f32.mrb[21].mxu0  ;;  %v1043_v36 = vmul.f32 %v1606_v15, %v1606_v15  ;;  %v1966_v6 = vpop.f32.mrb[20].mxu1 }
 0x103   :  { %v971_v21 = vadd.f32 %v970_v16, %v457_v18  ;;  %v1041_v22 = vmul.f32 %v457_v18, %v457_v18  ;;  %v1103_v25 = vadd.f32 %v1102_v14, %v1040_v13  ;;  %v1607_v26 = vpop.f32.mrb[22].mxu0  ;;  %v1968_v7 = vpop.f32.mrb[21].mxu1 }
 0x104   :  { %v1416_v28 = vpack.c.bf16 %v1607_v26, %v1606_v15  ;;  %v460_v30 = vpop.f32.mrb[23].mxu0  ;;  %v1044_v41 = vmul.f32 %v1607_v26, %v1607_v26 }
 0x105   :  { %v1104_v31 = vadd.f32 %v1103_v25, %v1041_v22  ;;  %v1411_v33 = vpack.c.bf16 %v460_v30, %v457_v18  ;;  %v972_v34 = vadd.f32 %v971_v21, %v460_v30  ;;  %v1042_v35 = vmul.f32 %v460_v30, %v460_v30 }
 0x106   :  { %1528 = vst [vmem:[%s2127_s2 + $0x58] sm:$0xff] %v1416_v28  }
 0x107   :  { %1527 = vst [vmem:[%s2127_s2 + $0x50] sm:$0xff] %v1411_v33   ;;  %v973_v37 = vadd.f32 %v1606_v15, %v972_v34  ;;  %v1105_v38 = vadd.f32 %v1104_v31, %v1042_v35  ;;  %v1970_v15 = vpop.f32.mrb[22].mxu1 }
 0x108   :  { %v1496_v18 = vpack.c.bf16 %v1970_v15, %v1966_v6  ;;  %v1974_v19 = vpop.f32.mrb[23].mxu1 }
 0x109   :  { %v1106_v42 = vadd.f32 %v1105_v38, %v1043_v36  ;;  %v1610_v43 = vpop.f32.mrb[24].mxu0  ;;  %v974_v44 = vadd.f32 %v1607_v26, %v973_v37  ;;  %v1491_v27 = vpack.c.bf16 %v1974_v19, %v1968_v7 }
 0x10a   :  { %v473_v46 = vpop.f32.mrb[25].mxu0  ;;  %v1047_v2 = vmul.f32 %v1610_v43, %v1610_v43  ;;  %1544 = vst [vmem:[%s2127_s2 + $0xd8] sm:$0xff] %v1496_v18  }
 0x10b   :  { %v975_v51 = vadd.f32 %v974_v44, %v473_v46  ;;  %v1045_v52 = vmul.f32 %v473_v46, %v473_v46  ;;  %v1107_v54 = vadd.f32 %v1106_v42, %v1044_v41  ;;  %v1611_v55 = vpop.f32.mrb[26].mxu0  ;;  %1543 = vst [vmem:[%s2127_s2 + $0xd0] sm:$0xff] %v1491_v27   ;;  %v1990_v41 = vpop.f32.mrb[24].mxu1 }
 0x10c   :  { %v1426_v58 = vpack.c.bf16 %v1611_v55, %v1610_v43  ;;  %v476_v59 = vpop.f32.mrb[27].mxu0  ;;  %v1048_v9 = vmul.f32 %v1611_v55, %v1611_v55  ;;  %v1992_v42 = vpop.f32.mrb[25].mxu1 }
 0x10d   :  { %v1108_v60 = vadd.f32 %v1107_v54, %v1045_v52  ;;  %v1421_v61 = vpack.c.bf16 %v476_v59, %v473_v46  ;;  %v976_v62 = vadd.f32 %v975_v51, %v476_v59  ;;  %v1046_v1 = vmul.f32 %v476_v59, %v476_v59  ;;  %v1996_v51 = vpop.f32.mrb[26].mxu1 }
 0x10e   :  { %1530 = vst [vmem:[%s2127_s2 + $0x68] sm:$0xff] %v1426_v58   ;;  %v1506_v52 = vpack.c.bf16 %v1996_v51, %v1990_v41  ;;  %v2000_v54 = vpop.f32.mrb[27].mxu1 }
 0x10f   :  { %1529 = vst [vmem:[%s2127_s2 + $0x60] sm:$0xff] %v1421_v61   ;;  %v977_v3 = vadd.f32 %v1610_v43, %v976_v62  ;;  %v1109_v4 = vadd.f32 %v1108_v60, %v1046_v1  ;;  %v1501_v58 = vpack.c.bf16 %v2000_v54, %v1992_v42  ;;  %v1054_v61 = vmul.f32 %v1854_v8, %v1854_v8 }
 0x110   :  { %1546 = vst [vmem:[%s2127_s2 + $0xe8] sm:$0xff] %v1506_v52  }
 0x111   :  { %v1110_v10 = vadd.f32 %v1109_v4, %v1047_v2  ;;  %v1614_v13 = vpop.f32.mrb[28].mxu0  ;;  %v978_v14 = vadd.f32 %v1611_v55, %v977_v3  ;;  %1545 = vst [vmem:[%s2127_s2 + $0xe0] sm:$0xff] %v1501_v58   ;;  %v1056_v4 = vmul.f32 %v1850_v5, %v1850_v5 }
 0x112   :  { %v489_v16 = vpop.f32.mrb[29].mxu0  ;;  %v1051_v36 = vmul.f32 %v1614_v13, %v1614_v13  ;;  %v2017_v2 = vpop.f32.mrb[28].mxu1 }
 0x113   :  { %v979_v21 = vadd.f32 %v978_v14, %v489_v16  ;;  %v1049_v22 = vmul.f32 %v489_v16, %v489_v16  ;;  %v1111_v25 = vadd.f32 %v1110_v10, %v1048_v9  ;;  %v1615_v26 = vpop.f32.mrb[30].mxu0  ;;  %v2019_v3 = vpop.f32.mrb[29].mxu1  ;;  %v1057_v10 = vmul.f32 %v1872_v24, %v1872_v24 }
 0x114   :  { %v1436_v28 = vpack.c.bf16 %v1615_v26, %v1614_v13  ;;  %v492_v30 = vpop.f32.mrb[31].mxu0  ;;  %v1052_v43 = vmul.f32 %v1615_v26, %v1615_v26 }
 0x115   :  { %v1112_v31 = vadd.f32 %v1111_v25, %v1049_v22  ;;  %v1431_v33 = vpack.c.bf16 %v492_v30, %v489_v16  ;;  %v980_v34 = vadd.f32 %v979_v21, %v492_v30  ;;  %v1050_v35 = vmul.f32 %v492_v30, %v492_v30 }
 0x116   :  { %1532 = vst [vmem:[%s2127_s2 + $0x78] sm:$0xff] %v1436_v28   ;;  %v1058_v25 = vmul.f32 %v1878_v32, %v1878_v32  ;;  %v1060_v28 = vmul.f32 %v1874_v29, %v1874_v29 }
 0x117   :  { %1531 = vst [vmem:[%s2127_s2 + $0x70] sm:$0xff] %v1431_v33   ;;  %v981_v37 = vadd.f32 %v1614_v13, %v980_v34  ;;  %v1113_v38 = vadd.f32 %v1112_v31, %v1050_v35  ;;  %v2026_v13 = vpop.f32.mrb[30].mxu1  ;;  %v1061_v33 = vmul.f32 %v1896_v48, %v1896_v48 }
 0x118   :  { %v1516_v14 = vpack.c.bf16 %v2026_v13, %v2017_v2 }
 0x119   :  { %v1114_v44 = vadd.f32 %v1113_v38, %v1051_v36  ;;  %v982_v46 = vadd.f32 %v1615_v26, %v981_v37  ;;  %v1062_v37 = vmul.f32 %v1902_v56, %v1902_v56 }
 0x11a   :  { %1548 = vst [vmem:[%s2127_s2 + $0xf8] sm:$0xff] %v1516_v14  }
 0x11b   :  { %v983_v55 = vadd.f32 %v982_v46, %v1848_v0  ;;  %v1115_v57 = vadd.f32 %v1114_v44, %v1052_v43  ;;  %v1055_v0 = vmul.f32 %v1846_v63, %v1846_v63 }
 0x11d   :  { %v1116_v59 = vadd.f32 %v1115_v57, %v1053_v49  ;;  %v984_v60 = vadd.f32 %v983_v55, %v1854_v8  ;;  %v1066_v57 = vmul.f32 %v1926_v20, %v1926_v20 }
 0x11f   :  { %v985_v62 = vadd.f32 %v1846_v63, %v984_v60  ;;  %v1117_v1 = vadd.f32 %v1116_v59, %v1054_v61  ;;  %v2030_v63 = vpop.f32.mrb[31].mxu1 }
 0x120   :  { %v1511_v21 = vpack.c.bf16 %v2030_v63, %v2019_v3 }
 0x121   :  { %v1118_v9 = vadd.f32 %v1117_v1, %v1055_v0  ;;  %v986_v8 = vadd.f32 %v1850_v5, %v985_v62 }
 0x122   :  { %1547 = vst [vmem:[%s2127_s2 + $0xf0] sm:$0xff] %v1511_v21  }
 0x123   :  { %v987_v16 = vadd.f32 %v986_v8, %v1872_v24  ;;  %v1119_v18 = vadd.f32 %v1118_v9, %v1056_v4  ;;  %v1059_v24 = vmul.f32 %v1870_v23, %v1870_v23  ;;  %v1070_v4 = vmul.f32 %v1950_v50, %v1950_v50 }
 0x125   :  { %v1120_v5 = vadd.f32 %v1119_v18, %v1057_v10  ;;  %v988_v22 = vadd.f32 %v987_v16, %v1878_v32 }
 0x127   :  { %v989_v26 = vadd.f32 %v1870_v23, %v988_v22  ;;  %v1121_v27 = vadd.f32 %v1120_v5, %v1058_v25  ;;  %v1063_v23 = vmul.f32 %v1894_v47, %v1894_v47  ;;  %v1074_v5 = vmul.f32 %v1974_v19, %v1974_v19 }
 0x129   :  { %v1122_v30 = vadd.f32 %v1121_v27, %v1059_v24  ;;  %v990_v31 = vadd.f32 %v1874_v29, %v989_v26  ;;  %v1064_v29 = vmul.f32 %v1898_v53, %v1898_v53 }
 0x12b   :  { %v991_v32 = vadd.f32 %v990_v31, %v1896_v48  ;;  %v1123_v34 = vadd.f32 %v1122_v30, %v1060_v28  ;;  %v1065_v48 = vmul.f32 %v1920_v12, %v1920_v12  ;;  %v1078_v31 = vmul.f32 %v2000_v54, %v2000_v54 }
 0x12d   :  { %v1124_v35 = vadd.f32 %v1123_v34, %v1061_v33  ;;  %v992_v36 = vadd.f32 %v991_v32, %v1902_v56 }
 0x12f   :  { %v993_v38 = vadd.f32 %v1894_v47, %v992_v36  ;;  %v1125_v43 = vadd.f32 %v1124_v35, %v1062_v37  ;;  %v1067_v47 = vmul.f32 %v1918_v11, %v1918_v11 }
 0x131   :  { %v1126_v44 = vadd.f32 %v1125_v43, %v1063_v23  ;;  %v994_v46 = vadd.f32 %v1898_v53, %v993_v38  ;;  %v1068_v53 = vmul.f32 %v1922_v17, %v1922_v17  ;;  %v1082_v38 = vmul.f32 %v2030_v63, %v2030_v63 }
 0x133   :  { %v995_v49 = vadd.f32 %v994_v46, %v1920_v12  ;;  %v1127_v52 = vadd.f32 %v1126_v44, %v1064_v29  ;;  %v1069_v12 = vmul.f32 %v1944_v40, %v1944_v40 }
 0x135   :  { %v1128_v55 = vadd.f32 %v1127_v52, %v1065_v48  ;;  %v996_v56 = vadd.f32 %v995_v49, %v1926_v20 }
 0x137   :  { %v997_v58 = vadd.f32 %v1918_v11, %v996_v56  ;;  %v1129_v59 = vadd.f32 %v1128_v55, %v1066_v57  ;;  %v1071_v11 = vmul.f32 %v1942_v39, %v1942_v39 }
 0x139   :  { %v1130_v60 = vadd.f32 %v1129_v59, %v1067_v47  ;;  %v998_v61 = vadd.f32 %v1922_v17, %v997_v58  ;;  %v1072_v17 = vmul.f32 %v1946_v45, %v1946_v45 }
 0x13b   :  { %v999_v0 = vadd.f32 %v998_v61, %v1944_v40  ;;  %v1131_v62 = vadd.f32 %v1130_v60, %v1068_v53  ;;  %v1073_v40 = vmul.f32 %v1968_v7, %v1968_v7 }
 0x13d   :  { %v1132_v1 = vadd.f32 %v1131_v62, %v1069_v12  ;;  %v1000_v20 = vadd.f32 %v999_v0, %v1950_v50 }
 0x13f   :  { %v1001_v9 = vadd.f32 %v1942_v39, %v1000_v20  ;;  %v1133_v8 = vadd.f32 %v1132_v1, %v1070_v4  ;;  %v1075_v39 = vmul.f32 %v1966_v6, %v1966_v6 }
 0x141   :  { %v1134_v10 = vadd.f32 %v1133_v8, %v1071_v11  ;;  %v1002_v14 = vadd.f32 %v1946_v45, %v1001_v9  ;;  %v1076_v45 = vmul.f32 %v1970_v15, %v1970_v15 }
 0x143   :  { %v1003_v16 = vadd.f32 %v1002_v14, %v1968_v7  ;;  %v1135_v18 = vadd.f32 %v1134_v10, %v1072_v17  ;;  %v1077_v7 = vmul.f32 %v1992_v42, %v1992_v42 }
 0x145   :  { %v1136_v21 = vadd.f32 %v1135_v18, %v1073_v40  ;;  %v1004_v50 = vadd.f32 %v1003_v16, %v1974_v19 }
 0x147   :  { %v1005_v22 = vadd.f32 %v1966_v6, %v1004_v50  ;;  %v1137_v25 = vadd.f32 %v1136_v21, %v1074_v5  ;;  %v1079_v6 = vmul.f32 %v1990_v41, %v1990_v41 }
 0x149   :  { %v1138_v24 = vadd.f32 %v1137_v25, %v1075_v39  ;;  %v1006_v26 = vadd.f32 %v1970_v15, %v1005_v22  ;;  %v1080_v15 = vmul.f32 %v1996_v51, %v1996_v51 }
 0x14b   :  { %v1007_v27 = vadd.f32 %v1006_v26, %v1992_v42  ;;  %v1139_v28 = vadd.f32 %v1138_v24, %v1076_v45  ;;  %v1081_v42 = vmul.f32 %v2019_v3, %v2019_v3 }
 0x14d   :  { %v1140_v30 = vadd.f32 %v1139_v28, %v1077_v7  ;;  %v1008_v19 = vadd.f32 %v1007_v27, %v2000_v54 }
 0x14f   :  { %v1009_v33 = vadd.f32 %v1990_v41, %v1008_v19  ;;  %v1141_v32 = vadd.f32 %v1140_v30, %v1078_v31  ;;  %v1083_v41 = vmul.f32 %v2017_v2, %v2017_v2 }
 0x151   :  { %v1142_v34 = vadd.f32 %v1141_v32, %v1079_v6  ;;  %v1010_v35 = vadd.f32 %v1996_v51, %v1009_v33  ;;  %v1084_v51 = vmul.f32 %v2026_v13, %v2026_v13 }
 0x153   :  { %v1011_v36 = vadd.f32 %v1010_v35, %v2019_v3  ;;  %v1143_v37 = vadd.f32 %v1142_v34, %v1080_v15 }
 0x155   :  { %v1144_v23 = vadd.f32 %v1143_v37, %v1081_v42  ;;  %v1012_v54 = vadd.f32 %v1011_v36, %v2030_v63 }
 0x157   :  { %v1013_v43 = vadd.f32 %v2017_v2, %v1012_v54  ;;  %v1145_v29 = vadd.f32 %v1144_v23, %v1082_v38 }
 0x159   :  { %v1014_v44 = vadd.f32 %v2026_v13, %v1013_v43  ;;  %v1146_v46 = vadd.f32 %v1145_v29, %v1083_v41 }
 0x15b   :  { %v1015_v3 = vrot.slane %v1014_v44, 4  ;;  %v1147_v48 = vadd.f32 %v1146_v46, %v1084_v51 }
 0x15d   :  { %v1016_v49 = vadd.f32 %v1015_v3, %v1014_v44  ;;  %v1148_v52 = vrot.slane %v1147_v48, 4 }
 0x15f   :  { %v1017_v55 = vrot.slane %v1016_v49, 2  ;;  %v1149_v56 = vadd.f32 %v1148_v52, %v1147_v48 }
 0x161   :  { %v1018_v57 = vadd.f32 %v1017_v55, %v1016_v49  ;;  %v1150_v63 = vrot.slane %v1149_v56, 2 }
 0x163   :  { %v1019_v47 = vrot.slane %v1018_v57, 1  ;;  %v1151_v58 = vadd.f32 %v1150_v63, %v1149_v56 }
 0x165   :  { %v1152_v59 = vrot.slane %v1151_v58, 1  ;;  %v1020_v2 = vadd.f32 %v1019_v47, %v1018_v57 }
 0x167   :  { %v1153_v53 = vadd.f32 %v1152_v59, %v1151_v58 }
 0x169   :  { %v1155_v60 = vsel %vm1154_vm1, %v1020_v2, %v1153_v53 }
 0x16a   :  { %1156 = vst [vmem:[%s2128_s3] sm:$0x3] %v1155_v60 }

// kernel: dense_block_forward.10
= control target key start
LH: loop header
LB: loop body
LE: loop exit
PB: predicated region body
PF: predicated region fallthrough
CT: control target
= control target key end

     0   :  { %s4239_s24 = smov 0   ;;  %s4241_s25 = smov 0   ;;  %s4980_s0 = inlined_call_operand.vmem [shape: bf16[2,16,16,128], index: 0, kind: input, shape index: {}, may-alias: {0,1,2}]   ;;  %s4981_s1 = inlined_call_operand.vmem [shape: bf16[2,16,16,128], index: 1, kind: input, shape index: {}, may-alias: {0,1,2}]   ;;  %s4982_s2 = inlined_call_operand.vmem [shape: bf16[2,16,16,128], index: 2, kind: input, shape index: {}, may-alias: {0,1,2}]   ;;  %s4983_s3 = inlined_call_operand.vmem [shape: f32[1,128], index: 3, kind: input, shape index: {}]   ;;  %s4984_s4 = inlined_call_operand.vmem [shape: f32[1,128], index: 4, kind: input, shape index: {}]   ;;  %s4985_s5 = inlined_call_operand.vmem [shape: bf16[9,128,128], index: 5, kind: input, shape index: {}]   ;;  %s4986_s6 = inlined_call_operand.vmem [shape: bf16[2,256,128], index: 6, kind: output, shape index: {0}]   ;;  %s4987_s7 = inlined_call_operand.vmem [shape: f32[2,2,2,128], index: 7, kind: output, shape index: {1}]  }
   0x1   :  { %s4243_s26 = smov 0   ;;  %s4245_s27 = smov 0  }
   0x2   :  { %s4247_s28 = smov 0  }
   0x3 LB: > { %s27_s29 = sadd.s32 1, %s4189_s26  ;;  %s30_s30 = sadd.s32 1, %s4193_s27  ;;  %s4197_s28 = sphi %s4247_s28, %s18_s28   ;;  %s4193_s27 = sphi %s4245_s27, %s4996_s27   ;;  %s4189_s26 = sphi %s4243_s26, %s4995_s26   ;;  %s4185_s25 = sphi %s4241_s25, %s4994_s25   ;;  %s4181_s24 = sphi %s4239_s24, %s4993_s24  }
   0x4   : > { %p28_p0 = scmp.ge.s32.totalorder %s27_s29, 2  ;;  %p3112_p1 = scmp.ge.s32.totalorder %s4197_s28, 1 }
   0x5   : > { %p328_p2 = scmp.lt.s32.totalorder %s4197_s28, 5 }
   0x6   : > { %s4998_s29 = smov (%p28_p0, %s27_s29), 0  ;;  %s5000_s30 = smov (!%p28_p0, %s30_s30), %s4193_s27 }
   0x7   : > { %p329_p3 = pnand %p3112_p1, %p328_p2  ;;  %p32_p4 = scmp.ge.s32.totalorder %s5000_s30, 2 }
   0x8   : > { %v4087_v0 = vld [vmem:[%s4985_s5] sm:$0xff] (!%p329_p3)   ;;  %s4275_s10 = sshll.u32 (!%p329_p3), %s4181_s24, 3  ;;  %p404_p5 = scmp.lt.s32.totalorder (!%p329_p3), %s4185_s25, 1  ;;  %v4089_v2 = vld [vmem:[%s4985_s5 + $0x8] sm:$0xff] (!%p329_p3)   ;;  %v4091_v4 = vld [vmem:[%s4985_s5 + $0x10] sm:$0xff] (!%p329_p3)   ;;  %vm691_vm2 = vcmask (!%p329_p3), 1040384  }
   0x9   : > { %s5002_s30 = smov (%p32_p4, %s5000_s30), 0  ;;  %332 = sbr.rel (%p329_p3) target bundleno = 449 (0x1c1), region = 44 }
   0xa   : > { %v4088_v1 = vld [vmem:[%s4985_s5 + $0x100] sm:$0xff] (!%p329_p3)   ;;  %3615 = vmatprep.subr.bf16.mxu1 (!%p329_p3), %v4087_v0  ;;  %p406_p6 = scmp.lt.s32.totalorder (!%p329_p3), %s4275_s10, 15  ;;  %v4090_v3 = vld [vmem:[%s4985_s5 + $0x108] sm:$0xff] (!%p329_p3)   ;;  %v4092_v5 = vld [vmem:[%s4985_s5 + $0x110] sm:$0xff] (!%p329_p3)   ;;  %s3118_s9 = sadd.s32 (!%p329_p3), 4294967295, %s4275_s10  ;;  %vm1222_vm5 = vcmask (!%p329_p3), 1046528  }
   0xb   : > { %3743 = vmatprep.subr.bf16.mxu0 (!%p329_p3), %v4088_v1  ;;  %3616 = vmatpush3.bf16.msra.mxu1 (!%p329_p3), %v4087_v0  ;;  %v4093_v6 = vld [vmem:[%s4985_s5 + $0x18] sm:$0xff] (!%p329_p3)   ;;  %p416_p7 = scmp.gt.s32.totalorder (!%p329_p3), %s3118_s9, 0  ;;  %p3119_p8 = scmp.lt.s32.totalorder (!%p329_p3), %s3118_s9, 15  ;;  %v4095_v8 = vld [vmem:[%s4985_s5 + $0x20] sm:$0xff] (!%p329_p3)   ;;  %v4097_v10 = vld [vmem:[%s4985_s5 + $0x28] sm:$0xff] (!%p329_p3)  }
   0xc   : > { %3744 = vmatpush3.bf16.msra.mxu0 (!%p329_p3), %v4088_v1  ;;  %3617 = vmatprep.subr.bf16.mxu1 (!%p329_p3), %v4089_v2  ;;  %v4094_v7 = vld [vmem:[%s4985_s5 + $0x118] sm:$0xff] (!%p329_p3)   ;;  %v4096_v9 = vld [vmem:[%s4985_s5 + $0x120] sm:$0xff] (!%p329_p3)   ;;  %p591_p9 = scmp.eq.s32.totalorder (!%p329_p3), %s4181_s24, 0  ;;  %v4098_v11 = vld [vmem:[%s4985_s5 + $0x128] sm:$0xff] (!%p329_p3)   ;;  %vm692_vm0 = vsmask.f32 (!%p329_p3), 256 }
   0xd   : > { %3745 = vmatprep.subr.bf16.mxu0 (!%p329_p3), %v4090_v3  ;;  %v4329_v12 = vld [vmem:[%s4983_s3] ss:$0 sm:$0xff] (!%p329_p3)  ;;  %v4099_v14 = vld [vmem:[%s4985_s5 + $0x30] sm:$0xff] (!%p329_p3)   ;;  %v4101_v40 = vld [vmem:[%s4985_s5 + $0x38] sm:$0xff] (!%p329_p3)   ;;  %vm891_vm4 = vsmask.f32 (!%p329_p3), 7424 }
   0xe   : > { %v4341_v15 = vld [vmem:[%s4984_s4] ss:$0 sm:$0xff] (!%p329_p3)  ;;  %v4100_v19 = vld [vmem:[%s4985_s5 + $0x130] sm:$0xff] (!%p329_p3)   ;;  %v4102_v45 = vld [vmem:[%s4985_s5 + $0x138] sm:$0xff] (!%p329_p3)   ;;  %s432_s21 = sadd.s32 (!%p329_p3), 8, %s4275_s10  ;;  %p596_p11 = scmp.eq.s32.totalorder (!%p329_p3), %s4181_s24, 1 }
   0xf   : > { %3618 = vmatpush3.bf16.msra.mxu1 (!%p329_p3), %v4089_v2  ;;  %v4103_v59 = vld [vmem:[%s4985_s5 + $0x40] sm:$0xff] (!%p329_p3)   ;;  %vm4394_vm3 = vmand (!%p329_p3), %vm691_vm2, %vm692_vm0  ;;  %p4543_p10 = scmp.lt.s32.totalorder (!%p329_p3), %s432_s21, 15  ;;  %p460_p13 = scmp.lt.s32.totalorder (!%p329_p3), %s4181_s24, 1 }
  0x10   : > { %s5004_s25 = smov (!%p404_p5, %s4185_s25), 1  ;;  %3746 = vmatpush3.bf16.msra.mxu0 %v4090_v3  ;;  %3619 = vmatprep.subr.bf16.mxu1 %v4091_v4  ;;  %s5006_s9 = smov (!%p416_p7, %s3118_s9), 0  ;;  %v4384_v2 = vld [vmem:[%s4985_s5 + $0x140] sm:$0xff]  }
  0x11   : > { %s407_s19 = scalar_select %p406_p6, %s4275_s10, 15  ;;  %3747 = vmatprep.subr.bf16.mxu0 %v4092_v5 }
  0x12   : > { %s4297_s22 = sshll.u32 %s5004_s25, 5  ;;  %s5008_s9 = smov (!%p3119_p8, %s5006_s9), 15 }
  0x13   : > { %s3114_s23 = sshll.u32 %s407_s19, 1  ;;  %3620 = vmatpush3.bf16.msra.mxu1 %v4091_v4  ;;  %s5010_s21 = smov (!%p4543_p10, %s432_s21), 15 }
  0x14   : > { %s410_s8 = sadd.s32 %s4297_s22, %s3114_s23  ;;  %3748 = vmatpush3.bf16.msra.mxu0 %v4092_v5  ;;  %3621 = vmatprep.subr.bf16.mxu1 %v4093_v6  ;;  %s5012_s21 = smov (!%p4543_p10, %s5010_s21), 15 }
  0x15   : > { %s3116_s15 = sshll.u32 %s410_s8, 2  ;;  %3749 = vmatprep.subr.bf16.mxu0 %v4094_v7  ;;  %s3124_s8 = sshll.u32 %s5008_s9, 1 }
  0x16   : > { %s4316_s23 = scalar_lea.vmem %s4980_s0, %s3116_s15  ;;  %s424_s16 = sadd.s32 %s3124_s8, %s4297_s22 }
  0x17   : > { %3622 = vmatpush3.bf16.msra.mxu1 %v4093_v6  ;;  %s3126_s15 = sshll.u32 %s424_s16, 2  ;;  %v3378_v13 = vld [vmem:[%s4316_s23] sm:$0xff]   ;;  %v3457_v18 = vld [vmem:[%s4316_s23 + $0x8] sm:$0xff]   ;;  %v3458_v34 = vld [vmem:[%s4316_s23 + $0x10] sm:$0xff]   ;;  %s3131_s17 = sshll.u32 %s5012_s21, 1 }
  0x18   : > { %3750 = vmatpush3.bf16.msra.mxu0 %v4094_v7  ;;  %3623 = vmatprep.subr.bf16.mxu1 %v4095_v8  ;;  %s426_s11 = scalar_lea.vmem %s4981_s1, %s3126_s15  ;;  %v3379_v16 = vunpack.c.l.bf16 %v3378_v13  ;;  %v3380_v17 = vunpack.c.h.bf16 %v3378_v13  ;;  %v3383_v21 = vunpack.c.l.bf16 %v3457_v18  ;;  %v3384_v22 = vunpack.c.h.bf16 %v3457_v18  ;;  %v3459_v39 = vld [vmem:[%s4316_s23 + $0x18] sm:$0xff]   ;;  %v4387_v3 = vld [vmem:[%s4316_s23 + $0x20] sm:$0xff]   ;;  %s441_s21 = sadd.s32 %s3131_s17, %s4297_s22 }
  0x19   : > { %3751 = vmatprep.subr.bf16.mxu0 %v4096_v9  ;;  %v3410_v20 = vld [vmem:[%s426_s11] sm:$0xff]   ;;  %s592_s16 = scalar_select %p591_p9, 1, 0  ;;  %v3387_v38 = vunpack.c.l.bf16 %v3458_v34  ;;  %v3388_v44 = vunpack.c.h.bf16 %v3458_v34  ;;  %v3391_v53 = vunpack.c.l.bf16 %v3459_v39  ;;  %v3392_v57 = vunpack.c.h.bf16 %v3459_v39  ;;  %v4105_v34 = vld [vmem:[%s4985_s5 + $0x48] sm:$0xff]  }
  0x1a   : > { %v3411_v23 = vunpack.c.l.bf16 %v3410_v20  ;;  %v3412_v24 = vunpack.c.h.bf16 %v3410_v20  ;;  %v507_v25 = vmul.f32 %v3379_v16, %v4329_v12  ;;  %v508_v26 = vmul.f32 %v3380_v17, %v4329_v12  ;;  %s597_s14 = scalar_select %p596_p11, 1, 0 }
  0x1b   : > { %3624 = vmatpush3.bf16.msra.mxu1 %v4095_v8  ;;  %v593_v27 = vstv %s592_s16  ;;  %v509_v28 = vmul.f32 %v3383_v21, %v4329_v12  ;;  %v510_v29 = vmul.f32 %v3384_v22, %v4329_v12  ;;  %v511_v49 = vmul.f32 %v3387_v38, %v4329_v12  ;;  %s3134_s11 = sshll.u32 %s4181_s24, 4  ;;  %s5016_s24 = smov (!%p460_p13, %s4181_s24), 1 }
  0x1c   : > { %3752 = vmatpush3.bf16.msra.mxu0 %v4096_v9  ;;  %3625 = vmatprep.subr.bf16.mxu1 %v4097_v10  ;;  %v573_v30 = vmul.f32 %v3411_v23, %v4329_v12  ;;  %v574_v31 = vmul.f32 %v3412_v24, %v4329_v12  ;;  %vm4355_vm1 = vcmp.eq.s32.totalorder %v593_v27, 1  ;;  %v529_v33 = vadd.f32 %v4341_v15, %v507_v25  ;;  %p451_p12 = scmp.lt.s32.totalorder %s3134_s11, 31  ;;  %s3137_s16 = sshll.u32 %s5004_s25, 1 }
  0x1d   : > { %3753 = vmatprep.subr.bf16.mxu0 %v4098_v11  ;;  %v530_v35 = vadd.f32 %v4341_v15, %v508_v26  ;;  %v531_v36 = vadd.f32 %v4341_v15, %v509_v28  ;;  %v532_v37 = vadd.f32 %v4341_v15, %v510_v29  ;;  %v512_v52 = vmul.f32 %v3388_v44, %v4329_v12  ;;  %s463_s15 = sadd.s32 %s3137_s16, %s5016_s24 }
  0x1e   : > { %v575_v41 = vadd.f32 %v4341_v15, %v573_v30  ;;  %v576_v42 = vadd.f32 %v4341_v15, %v574_v31  ;;  %v545_v43 = vmax.f32 %v529_v33, 0.0  ;;  %v533_v56 = vadd.f32 %v4341_v15, %v511_v49  ;;  %s5014_s11 = smov (!%p451_p12, %s3134_s11), 31  ;;  %s3138_s17 = sshll.u32 %s463_s15, 1 }
  0x1f   : > { %3626 = vmatpush3.bf16.msra.mxu1 %v4097_v10  ;;  %v546_v46 = vmax.f32 %v530_v35, 0.0  ;;  %v547_v47 = vmax.f32 %v531_v36, 0.0  ;;  %v548_v48 = vmax.f32 %v532_v37, 0.0  ;;  %v534_v60 = vadd.f32 %v4341_v15, %v512_v52 }
  0x20   : > { %3754 = vmatpush3.bf16.msra.mxu0 %v4098_v11  ;;  %3627 = vmatprep.subr.bf16.mxu1 %v4099_v14  ;;  %v577_v50 = vmax.f32 %v575_v41, 0.0  ;;  %v578_v51 = vmax.f32 %v576_v42, 0.0  ;;  %v513_v61 = vmul.f32 %v3391_v53, %v4329_v12  ;;  %v549_v5 = vmax.f32 %v533_v56, 0.0  ;;  %v4107_v56 = vld [vmem:[%s4985_s5 + $0x50] sm:$0xff]  }
  0x21   : > { %3755 = vmatprep.subr.bf16.mxu0 %v4100_v19  ;;  %v561_v54 = vpack.c.bf16 %v546_v46, %v545_v43  ;;  %v562_v55 = vpack.c.bf16 %v548_v48, %v547_v47  ;;  %v550_v6 = vmax.f32 %v534_v60, 0.0  ;;  %v514_v7 = vmul.f32 %v3392_v57, %v4329_v12  ;;  %v3461_v48 = vld [vmem:[%s4316_s23 + $0x28] sm:$0xff]  }
  0x22   : > { %v579_v58 = vpack.c.bf16 %v578_v51, %v577_v50  ;;  %v535_v16 = vadd.f32 %v4341_v15, %v513_v61  ;;  %v3395_v18 = vunpack.c.l.bf16 %v4387_v3  ;;  %v3396_v26 = vunpack.c.h.bf16 %v4387_v3  ;;  %v4106_v51 = vld [vmem:[%s4985_s5 + $0x148] sm:$0xff]  }
  0x23   : > { %3628 = vmatpush3.bf16.msra.mxu1 %v4099_v14  ;;  %v609_v62 = vshrl.u32 %v561_v54, 16  ;;  %v612_v63 = vshll.u32 %v561_v54, 16  ;;  %v616_v0 = vshrl.u32 %v562_v55, 16  ;;  %v619_v1 = vshll.u32 %v562_v55, 16 }
  0x24   : > { %3756 = vmatpush3.bf16.msra.mxu0 %v4100_v19  ;;  %3629 = vmatprep.subr.bf16.mxu1 %v4101_v40  ;;  %v595_v4 = vsel %vm4355_vm1, 0, %v579_v58  ;;  %v563_v14 = vpack.c.bf16 %v550_v6, %v549_v5  ;;  %v536_v17 = vadd.f32 %v4341_v15, %v514_v7  ;;  %v515_v47 = vmul.f32 %v3395_v18, %v4329_v12  ;;  %v4472_v5 = vld [vmem:[%s4316_s23 + $0x38] sm:$0xff]  }
  0x25   : > { %3757 = vmatprep.subr.bf16.mxu0 %v4102_v45  ;;  %v602_v8 = vshrl.u32 %v595_v4, 16  ;;  %v605_v9 = vshll.u32 %v595_v4, 16  ;;  %v611_v11 = vrot.slane %v609_v62, 7  ;;  %v618_v13 = vrot.slane %v616_v0, 7 }
  0x26   : > { %v623_v25 = vshrl.u32 %v563_v14, 16  ;;  %v626_v35 = vshll.u32 %v563_v14, 16  ;;  %v552_v46 = vmax.f32 %v536_v17, 0.0  ;;  %v516_v58 = vmul.f32 %v3396_v26, %v4329_v12  ;;  %v4109_v14 = vld [vmem:[%s4985_s5 + $0x58] sm:$0xff]  }
  0x27   : > { %3630 = vmatpush3.bf16.msra.mxu1 %v4101_v40  ;;  %v4401_v19 = vrot.slane %v602_v8, 7  ;;  %v614_v20 = vor.u32 %v612_v63, %v611_v11  ;;  %v4405_v21 = vsel %vm4394_vm3, %v611_v11, 0  ;;  %v621_v22 = vor.u32 %v619_v1, %v618_v13  ;;  %v3462_v63 = vld [vmem:[%s4316_s23 + $0x30] sm:$0xff]   ;;  %s3133_s23 = sshll.u32 %s441_s21, 2  ;;  %s465_s21 = scalar_lea.vmem %s4987_s7, %s3138_s17 }
  0x28   : > { %3758 = vmatpush3.bf16.msra.mxu0 %v4102_v45  ;;  %3647 = vmatprep.subr.bf16.mxu1 %v4103_v59  ;;  %v912_v23 = vshll.u32 %v4405_v21, 16  ;;  %v4411_v24 = vsel %vm4394_vm3, %v618_v13, 0  ;;  %v625_v43 = vrot.slane %v623_v25, 7  ;;  %v551_v45 = vmax.f32 %v535_v16, 0.0  ;;  %v4108_v8 = vld [vmem:[%s4985_s5 + $0x150] sm:$0xff]   ;;  %s443_s12 = scalar_lea.vmem %s4982_s2, %s3133_s23 }
  0x29   : > { %3775 = vmatprep.subr.bf16.mxu0 %v4384_v2  ;;  %v607_v27 = vor.u32 %v605_v9, %v4401_v19  ;;  %v4417_v28 = vsel %vm4394_vm3, 0, %v614_v20  ;;  %v4421_v29 = vsel %vm4394_vm3, 0, %v621_v22  ;;  %v924_v30 = vshll.u32 %v4411_v24, 16 }
  0x2a   : > { %v905_v31 = vshrl.u32 %v4417_v28, 16  ;;  %v907_v32 = vshll.u32 %v4417_v28, 16  ;;  %v914_v33 = vrot.slane %v912_v23, 1  ;;  %v917_v37 = vshrl.u32 %v4421_v29, 16 }
  0x2b   : > { %v4431_v36 = vsel %vm4394_vm3, 0, %v607_v27  ;;  %v919_v38 = vshll.u32 %v4421_v29, 16  ;;  %v926_v39 = vrot.slane %v924_v30, 1  ;;  %v628_v52 = vor.u32 %v626_v35, %v625_v43 }
  0x2c   : > { %3631 = vmatprep.mubr.bf16.mxu1 %v4431_v36  ;;  %v893_v40 = vshrl.u32 %v4431_v36, 16  ;;  %v895_v41 = vshll.u32 %v4431_v36, 16  ;;  %v909_v42 = vrot.slane %v907_v32, 1  ;;  %v4449_v53 = vsel %vm4394_vm3, %v625_v43, 0  ;;  %v4110_v43 = vld [vmem:[%s4985_s5 + $0x158] sm:$0xff]  }
  0x2d   : > { %3632 = vmatmul.mubr.bf16.vlgmr.msra.gmra.mrb[0].mxu1 %v4417_v28  ;;  %v921_v44 = vrot.slane %v919_v38, 1  ;;  %v936_v55 = vshll.u32 %v4449_v53, 16  ;;  %v564_v57 = vpack.c.bf16 %v552_v46, %v551_v45  ;;  %v4461_v60 = vsel %vm4394_vm3, 0, %v628_v52  ;;  %v4111_v38 = vld [vmem:[%s4985_s5 + $0x60] sm:$0xff]  }
  0x2e   : > { %v4441_v49 = vrot.slane %v895_v41, 1  ;;  %v910_v50 = vor.u32 %v909_v42, %v905_v31  ;;  %3648 = vmatpush3.bf16.msra.mxu1 %v4103_v59  ;;  %3635 = vmatprep.mubr.bf16.mxu1 %v4421_v29  ;;  %v537_v61 = vadd.f32 %v4341_v15, %v515_v47  ;;  %v3399_v62 = vunpack.c.l.bf16 %v3461_v48 }
  0x2f   : > { %v922_v54 = vor.u32 %v921_v44, %v917_v37  ;;  %3649 = vmatprep.subr.bf16.mxu1 %v4105_v34  ;;  %v929_v1 = vshrl.u32 %v4461_v60, 16  ;;  %v931_v3 = vshll.u32 %v4461_v60, 16  ;;  %v938_v4 = vrot.slane %v936_v55, 1 }
  0x30   : > { %v4457_v59 = vsel %vm891_vm4, %v910_v50, %v914_v33  ;;  %v630_v6 = vshrl.u32 %v564_v57, 16  ;;  %v633_v7 = vshll.u32 %v564_v57, 16  ;;  %v538_v9 = vadd.f32 %v4341_v15, %v516_v58 }
  0x31   : > { %3759 = vmatprep.mubr.bf16.mxu0 %v4457_v59  ;;  %v4467_v0 = vsel %vm891_vm4, %v922_v54, %v926_v39  ;;  %v553_v11 = vmax.f32 %v537_v61, 0.0  ;;  %v933_v13 = vrot.slane %v931_v3, 1  ;;  %v3400_v16 = vunpack.c.h.bf16 %v3461_v48  ;;  %v4112_v3 = vld [vmem:[%s4985_s5 + $0x160] sm:$0xff]  }
  0x32   : > { %3760 = vmatmul.mubr.bf16.vlgmr.msra.gmra.mrb[0].mxu0 %v4467_v0  ;;  %3650 = vmatpush3.bf16.msra.mxu1 %v4105_v34  ;;  %v517_v17 = vmul.f32 %v3399_v62, %v4329_v12  ;;  %v3403_v18 = vunpack.c.l.bf16 %v3462_v63  ;;  %v632_v20 = vrot.slane %v630_v6, 7  ;;  %v554_v22 = vmax.f32 %v538_v9, 0.0  ;;  %v4113_v9 = vld [vmem:[%s4985_s5 + $0x68] sm:$0xff]  }
  0x33   : > { %3776 = vmatpush3.bf16.msra.mxu0 %v4384_v2  ;;  %3651 = vmatprep.subr.bf16.mxu1 %v4107_v56  ;;  %v3404_v23 = vunpack.c.h.bf16 %v3462_v63  ;;  %v3407_v25 = vunpack.c.l.bf16 %v4472_v5  ;;  %v934_v26 = vor.u32 %v933_v13, %v929_v1  ;;  %v518_v2 = vmul.f32 %v3400_v16, %v4329_v12 }
  0x34   : > { %3777 = vmatprep.subr.bf16.mxu0 %v4106_v51  ;;  %v539_v27 = vadd.f32 %v4341_v15, %v517_v17  ;;  %v519_v30 = vmul.f32 %v3403_v18, %v4329_v12  ;;  %v635_v31 = vor.u32 %v633_v7, %v632_v20  ;;  %v4491_v32 = vsel %vm4394_vm3, %v632_v20, 0 }
  0x35   : > { %3636 = vmatmul.mubr.bf16.gmra.mrb[4].mxu1 %v4461_v60  ;;  %v565_v33 = vpack.c.bf16 %v554_v22, %v553_v11  ;;  %v520_v34 = vmul.f32 %v3404_v23, %v4329_v12  ;;  %v4495_v35 = vsel %vm891_vm4, %v934_v26, %v938_v4  ;;  %v948_v37 = vshll.u32 %v4491_v32, 16  ;;  %v4114_v22 = vld [vmem:[%s4985_s5 + $0x168] sm:$0xff]   ;;  %v4115_v23 = vld [vmem:[%s4985_s5 + $0x70] sm:$0xff]  }
  0x36   : > { %3652 = vmatpush3.bf16.msra.mxu1 %v4107_v56  ;;  %v540_v39 = vadd.f32 %v4341_v15, %v518_v2  ;;  %v555_v41 = vmax.f32 %v539_v27, 0.0  ;;  %3763 = vmatprep.mubr.bf16.mxu0 %v4495_v35  ;;  %v4506_v42 = vsel %vm4394_vm3, 0, %v635_v31  ;;  %v541_v46 = vadd.f32 %v4341_v15, %v519_v30 }
  0x37   : > { %3778 = vmatpush3.bf16.msra.mxu0 %v4106_v51  ;;  %3653 = vmatprep.subr.bf16.mxu1 %v4109_v14  ;;  %v637_v44 = vshrl.u32 %v565_v33, 16  ;;  %v640_v45 = vshll.u32 %v565_v33, 16  ;;  %v941_v47 = vshrl.u32 %v4506_v42, 16  ;;  %v943_v48 = vshll.u32 %v4506_v42, 16 }
  0x38   : > { %3779 = vmatprep.subr.bf16.mxu0 %v4108_v8  ;;  %v950_v50 = vrot.slane %v948_v37, 1  ;;  %3639 = vmatprep.mubr.bf16.mxu1 %v4506_v42  ;;  %v556_v51 = vmax.f32 %v540_v39, 0.0  ;;  %v542_v54 = vadd.f32 %v4341_v15, %v520_v34  ;;  %v557_v55 = vmax.f32 %v541_v46, 0.0 }
  0x39   : > { %v639_v52 = vrot.slane %v637_v44, 7  ;;  %v3408_v56 = vunpack.c.h.bf16 %v4472_v5  ;;  %v945_v57 = vrot.slane %v943_v48, 1  ;;  %v521_v61 = vmul.f32 %v3407_v25, %v4329_v12 }
  0x3a   : > { %3654 = vmatpush3.bf16.msra.mxu1 %v4109_v14  ;;  %v566_v58 = vpack.c.bf16 %v556_v51, %v555_v41  ;;  %v4521_v62 = vsel %vm4394_vm3, %v4401_v19, 0  ;;  %v558_v4 = vmax.f32 %v542_v54, 0.0  ;;  %v898_v41 = vor.u32 %v4441_v49, %v893_v40  ;;  %v4116_v49 = vld [vmem:[%s4985_s5 + $0x170] sm:$0xff]  }
  0x3b   : > { %3780 = vmatpush3.bf16.msra.mxu0 %v4108_v8  ;;  %3655 = vmatprep.subr.bf16.mxu1 %v4111_v38  ;;  %v642_v63 = vor.u32 %v640_v45, %v639_v52  ;;  %v4525_v1 = vsel %vm4394_vm3, %v639_v52, 0  ;;  %v522_v5 = vmul.f32 %v3408_v56, %v4329_v12  ;;  %v946_v6 = vor.u32 %v945_v57, %v941_v47 }
  0x3c   : > { %3781 = vmatprep.subr.bf16.mxu0 %v4110_v43  ;;  %v960_v7 = vshll.u32 %v4525_v1, 16  ;;  %v644_v8 = vshrl.u32 %v566_v58, 16  ;;  %v647_v19 = vshll.u32 %v566_v58, 16  ;;  %v567_v13 = vpack.c.bf16 %v558_v4, %v557_v55 }
  0x3d   : > { %v4537_v11 = vsel %vm4394_vm3, 0, %v642_v63  ;;  %v543_v14 = vadd.f32 %v4341_v15, %v521_v61  ;;  %v544_v16 = vadd.f32 %v4341_v15, %v522_v5  ;;  %v4548_v17 = vsel %vm891_vm4, %v946_v6, %v950_v50  ;;  %v4117_v50 = vld [vmem:[%s4985_s5 + $0x78] sm:$0xff]   ;;  %v4119_v6 = vld [vmem:[%s4985_s5 + $0x80] sm:$0xff]  }
  0x3e   : > { %3656 = vmatpush3.bf16.msra.mxu1 %v4111_v38  ;;  %v953_v18 = vshrl.u32 %v4537_v11, 16  ;;  %v955_v20 = vshll.u32 %v4537_v11, 16  ;;  %3764 = vmatmul.mubr.bf16.gmra.mrb[4].mxu0 %v4548_v17  ;;  %v646_v25 = vrot.slane %v644_v8, 7  ;;  %v651_v26 = vshrl.u32 %v567_v13, 16  ;;  %v4118_v8 = vld [vmem:[%s4985_s5 + $0x178] sm:$0xff]  }
  0x3f   : > { %3782 = vmatpush3.bf16.msra.mxu0 %v4110_v43  ;;  %3640 = vmatmul.mubr.bf16.gmra.mrb[8].mxu1 %v4537_v11  ;;  %v654_v2 = vshll.u32 %v567_v13, 16  ;;  %v559_v27 = vmax.f32 %v543_v14, 0.0  ;;  %v962_v31 = vrot.slane %v960_v7, 1  ;;  %v560_v33 = vmax.f32 %v544_v16, 0.0 }
  0x40   : > { %3783 = vmatprep.subr.bf16.mxu0 %v4112_v3  ;;  %v957_v30 = vrot.slane %v955_v20, 1  ;;  %3657 = vmatprep.subr.bf16.mxu1 %v4113_v9  ;;  %v900_v34 = vshll.u32 %v4521_v62, 16  ;;  %v649_v37 = vor.u32 %v647_v19, %v646_v25  ;;  %v4563_v38 = vsel %vm4394_vm3, %v646_v25, 0  ;;  %v4120_v25 = vld [vmem:[%s4985_s5 + $0x180] sm:$0xff]  }
  0x41   : > { %v653_v39 = vrot.slane %v651_v26, 7  ;;  %v972_v44 = vshll.u32 %v4563_v38, 16  ;;  %v568_v45 = vpack.c.bf16 %v560_v33, %v559_v27  ;;  %v1227_v33 = vrot.slane %v4405_v21, 1 }
  0x42   : > { %3658 = vmatpush3.bf16.msra.mxu1 %v4113_v9  ;;  %v958_v43 = vor.u32 %v957_v30, %v953_v18  ;;  %v902_v46 = vrot.slane %v900_v34, 1  ;;  %v4577_v47 = vsel %vm4394_vm3, 0, %v649_v37  ;;  %v4121_v30 = vld [vmem:[%s4985_s5 + $0x88] sm:$0xff]  }
  0x43   : > { %3784 = vmatpush3.bf16.msra.mxu0 %v4112_v3  ;;  %3659 = vmatprep.subr.bf16.mxu1 %v4115_v23  ;;  %v656_v48 = vor.u32 %v654_v2, %v653_v39  ;;  %v4581_v40 = vsel %vm4394_vm3, %v653_v39, 0  ;;  %v965_v52 = vshrl.u32 %v4577_v47, 16  ;;  %v967_v54 = vshll.u32 %v4577_v47, 16  ;;  %v4123_v39 = vld [vmem:[%s4985_s5 + $0x90] sm:$0xff]  }
  0x44   : > { %3785 = vmatprep.subr.bf16.mxu0 %v4114_v22  ;;  %v4590_v51 = vsel %vm891_vm4, %v958_v43, %v962_v31  ;;  %v974_v55 = vrot.slane %v972_v44, 1  ;;  %3643 = vmatprep.mubr.bf16.mxu1 %v4577_v47  ;;  %v984_v57 = vshll.u32 %v4581_v40, 16  ;;  %v658_v58 = vshrl.u32 %v568_v45, 16 }
  0x45   : > { %3767 = vmatprep.mubr.bf16.mxu0 %v4590_v51  ;;  %v4598_v56 = vsel %vm4394_vm3, 0, %v656_v48  ;;  %v661_v61 = vshll.u32 %v568_v45, 16  ;;  %v969_v63 = vrot.slane %v967_v54, 1  ;;  %v903_v5 = vsel %vm891_vm4, %v898_v41, %v902_v46  ;;  %v4125_v45 = vld [vmem:[%s4985_s5 + $0x98] sm:$0xff]   ;;  %v4122_v54 = vld [vmem:[%s4985_s5 + $0x188] sm:$0xff]  }
  0x46   : > { %3660 = vmatpush3.bf16.msra.mxu1 %v4115_v23  ;;  %v977_v3 = vshrl.u32 %v4598_v56, 16  ;;  %v979_v4 = vshll.u32 %v4598_v56, 16  ;;  %v660_v7 = vrot.slane %v658_v58, 7  ;;  %v986_v13 = vrot.slane %v984_v57, 1  ;;  %v4127_v58 = vld [vmem:[%s4985_s5 + $0xa0] sm:$0xff]  }
  0x47   : > { %3786 = vmatpush3.bf16.msra.mxu0 %v4114_v22  ;;  %3644 = vmatmul.mubr.bf16.gmra.mrb[12].mxu1 %v4598_v56  ;;  %v970_v19 = vor.u32 %v969_v63, %v965_v52  ;;  %v1226_v31 = vrot.slane %v4417_v28, 1  ;;  %v1229_v44 = vrot.slane %v4421_v29, 1  ;;  %v1232_v46 = vrot.slane %v4461_v60, 1  ;;  %v4129_v63 = vld [vmem:[%s4985_s5 + $0xa8] sm:$0xff]  }
  0x48   : > { %3787 = vmatprep.subr.bf16.mxu0 %v4116_v49  ;;  %3661 = vmatprep.subr.bf16.mxu1 %v4117_v50  ;;  %v981_v9 = vrot.slane %v979_v4, 1  ;;  %v663_v14 = vor.u32 %v661_v61, %v660_v7  ;;  %v4616_v16 = vsel %vm4394_vm3, %v660_v7, 0  ;;  %v1233_v48 = vrot.slane %v4449_v53, 1 }
  0x49   : > { %3663 = vmatprep.mubr.bf16.mxu1 %v903_v5  ;;  %v4619_v18 = vsel %vm891_vm4, %v970_v19, %v974_v55  ;;  %v1683_v22 = vshll.u32 %v4616_v16, 16  ;;  %v4648_v21 = vsel %vm1222_vm5, %v1226_v31, %v1227_v33  ;;  %v1235_v61 = vrot.slane %v4506_v42, 1  ;;  %v4133_v31 = vld [vmem:[%s4985_s5 + $0xb8] sm:$0xff]  }
  0x4a   : > { %3662 = vmatpush3.bf16.msra.mxu1 %v4117_v50  ;;  %v982_v20 = vor.u32 %v981_v9, %v977_v3  ;;  %3768 = vmatmul.mubr.bf16.gmra.mrb[8].mxu0 %v4619_v18  ;;  %v4625_v23 = vsel %vm4394_vm3, 0, %v663_v14  ;;  %v4679_v57 = vsel %vm1222_vm5, %v1232_v46, %v1233_v48  ;;  %v598_v5 = vstv %s597_s14 }
  0x4b   : > { %3788 = vmatpush3.bf16.msra.mxu0 %v4116_v49  ;;  %3679 = vmatprep.subr.bf16.mxu1 %v4119_v6  ;;  %v1676_v2 = vshrl.u32 %v4625_v23, 16  ;;  %v1678_v27 = vshll.u32 %v4625_v23, 16  ;;  %v1685_v37 = vrot.slane %v1683_v22, 1  ;;  %v3414_v49 = vld [vmem:[%s443_s12] sm:$0xff]   ;;  %v1238_v7 = vrot.slane %v4537_v11, 1  ;;  %s454_s12 = sadd.s32 %s4297_s22, %s5014_s11 }
  0x4c   : > { %3789 = vmatprep.subr.bf16.mxu0 %v4118_v8  ;;  %v4631_v26 = vsel %vm891_vm4, %v982_v20, %v986_v13  ;;  %v3416_v50 = vunpack.c.h.bf16 %v3414_v49  ;;  %vm599_vm6 = vcmp.eq.s32.totalorder %v598_v5, 1  ;;  %v1223_v9 = vrot.slane %v4431_v36, 1  ;;  %v4131_v36 = vld [vmem:[%s4985_s5 + $0xb0] sm:$0xff]   ;;  %s3136_s13 = sshll.u32 %s454_s12, 2 }
  0x4d   : > { %3771 = vmatprep.mubr.bf16.mxu0 %v4631_v26  ;;  %v1680_v34 = vrot.slane %v1678_v27, 1  ;;  %v1224_v14 = vrot.slane %v4521_v62, 1  ;;  %v1241_v62 = vrot.slane %v4577_v47, 1  ;;  %s4900_s22 = scalar_lea.vmem %s4986_s6, %s3136_s13 }
  0x4e   : > { %v585_v55 = vmul.f32 %v3416_v50, %v4329_v12  ;;  %v4135_v50 = vld [vmem:[%s4985_s5 + $0xc0] sm:$0xff]  }
  0x4f   : > { %3790 = vmatpush3.bf16.msra.mxu0 %v4118_v8  ;;  %3664 = vmatmul.mubr.bf16.vlgmr.msra.gmra.mrb[0].mxu1 %v4457_v59  ;;  %v1681_v41 = vor.u32 %v1680_v34, %v1676_v2  ;;  %v1230_v59 = vrot.slane %v4411_v24, 1  ;;  %v3415_v24 = vunpack.c.l.bf16 %v3414_v49  ;;  %v1225_v33 = vsel %vm1222_vm5, %v1223_v9, %v1224_v14  ;;  %v4128_v34 = vld [vmem:[%s4985_s5 + $0x1a0] sm:$0xff]   ;;  %v4142_v9 = vld [vmem:[%s4985_s5 + $0x1d8] sm:$0xff]   ;;  %v4147_v14 = vld [vmem:[%s4985_s5 + $0xf0] sm:$0xff]  }
  0x50   : > { %3807 = vmatprep.subr.bf16.mxu0 %v4120_v25  ;;  %3680 = vmatpush3.bf16.msra.mxu1 %v4119_v6  ;;  %v587_v4 = vadd.f32 %v4341_v15, %v585_v55  ;;  %v4124_v6 = vld [vmem:[%s4985_s5 + $0x190] sm:$0xff]  }
  0x51   : > { %3681 = vmatprep.subr.bf16.mxu1 %v4121_v30  ;;  %3667 = vmatprep.mubr.bf16.mxu1 %v4467_v0  ;;  %v4651_v43 = vsel %vm891_vm4, %v1681_v41, %v1685_v37  ;;  %v4671_v52 = vsel %vm1222_vm5, %v1229_v44, %v1230_v59  ;;  %v584_v53 = vmul.f32 %v3415_v24, %v4329_v12  ;;  %v1236_v12 = vrot.slane %v4491_v32, 1  ;;  %v4130_v24 = vld [vmem:[%s4985_s5 + $0x1a8] sm:$0xff]  }
  0x52   : > { %3772 = vmatmul.mubr.bf16.gmra.mrb[12].mxu0 %v4651_v43  ;;  %v589_v19 = vmax.f32 %v587_v4, 0.0  ;;  %v1244_v37 = vrot.slane %v4598_v56, 1  ;;  %v4132_v4 = vld [vmem:[%s4985_s5 + $0x1b0] sm:$0xff]  }
  0x53   : > { %3791 = vmatprep.mubr.bf16.mxu0 %v4648_v21  ;;  %v586_v3 = vadd.f32 %v4341_v15, %v584_v53  ;;  %v1239_v15 = vrot.slane %v4525_v1, 1  ;;  %v4702_v13 = vsel %vm1222_vm5, %v1235_v61, %v1236_v12  ;;  %v4126_v1 = vld [vmem:[%s4985_s5 + $0x198] sm:$0xff]   ;;  %v1901_v61 = vrot.slane %v4616_v16, 1 }
  0x54   : > { %3682 = vmatpush3.bf16.msra.mxu1 %v4121_v30  ;;  %v1242_v30 = vrot.slane %v4563_v38, 1  ;;  %v4134_v12 = vld [vmem:[%s4985_s5 + $0x1b8] sm:$0xff]  }
  0x55   : > { %3683 = vmatprep.subr.bf16.mxu1 %v4123_v39  ;;  %v588_v8 = vmax.f32 %v586_v3, 0.0  ;;  %v4709_v22 = vsel %vm1222_vm5, %v1238_v7, %v1239_v15  ;;  %v4136_v7 = vld [vmem:[%s4985_s5 + $0x1c0] sm:$0xff]   ;;  %v4145_v15 = vld [vmem:[%s4985_s5 + $0xe8] sm:$0xff]  }
  0x56   : > { %v4735_v46 = vsel %vm1222_vm5, %v1241_v62, %v1242_v30  ;;  %v4153_v62 = vld [vmem:[%s4985_s5 + $0x210] sm:$0xff]  }
  0x57   : > { %3668 = vmatmul.mubr.bf16.gmra.mrb[4].mxu1 %v4495_v35  ;;  %v590_v32 = vpack.c.bf16 %v589_v19, %v588_v8  ;;  %v4138_v8 = vld [vmem:[%s4985_s5 + $0x1c8] sm:$0xff]   ;;  %v4143_v19 = vld [vmem:[%s4985_s5 + $0xe0] sm:$0xff]  }
  0x58   : > { %3684 = vmatpush3.bf16.msra.mxu1 %v4123_v39  ;;  %3671 = vmatprep.mubr.bf16.mxu1 %v4548_v17  ;;  %v1245_v39 = vrot.slane %v4581_v40, 1 }
  0x59   : > { %3685 = vmatprep.subr.bf16.mxu1 %v4125_v45  ;;  %v600_v20 = vsel %vm599_vm6, 0, %v590_v32  ;;  %v4140_v32 = vld [vmem:[%s4985_s5 + $0x1d0] sm:$0xff]  }
  0x5a   : > { %3792 = vmatmul.mubr.bf16.vlgmr.msra.gmra.mrb[0].mxu0 %v4671_v52  ;;  %v668_v2 = vshll.u32 %v600_v20, 16  ;;  %v4744_v10 = vsel %vm1222_vm5, %v1244_v37, %v1245_v39 }
  0x5b   : > { %3808 = vmatpush3.bf16.msra.mxu0 %v4120_v25  ;;  %3795 = vmatprep.mubr.bf16.mxu0 %v4679_v57  ;;  %v665_v25 = vshrl.u32 %v600_v20, 16  ;;  %v4149_v20 = vld [vmem:[%s4985_s5 + $0xf8] sm:$0xff]  }
  0x5c   : > { %3686 = vmatpush3.bf16.msra.mxu1 %v4125_v45  ;;  %3809 = vmatprep.subr.bf16.mxu0 %v4122_v54 }
  0x5d   : > { %3687 = vmatprep.subr.bf16.mxu1 %v4127_v58  ;;  %v667_v27 = vrot.slane %v665_v25, 7  ;;  %v4151_v25 = vld [vmem:[%s4985_s5 + $0x200] sm:$0xff]  }
  0x5f   : > { %3672 = vmatmul.mubr.bf16.gmra.mrb[8].mxu1 %v4590_v51  ;;  %3810 = vmatpush3.bf16.msra.mxu0 %v4122_v54  ;;  %v670_v41 = vor.u32 %v668_v2, %v667_v27  ;;  %v713_v38 = vsel %vm4394_vm3, %v667_v27, 0  ;;  %v4148_v2 = vld [vmem:[%s4985_s5 + $0x1f0] sm:$0xff]   ;;  %v4150_v27 = vld [vmem:[%s4985_s5 + $0x1f8] sm:$0xff]  }
  0x60   : > { %3688 = vmatpush3.bf16.msra.mxu1 %v4127_v58  ;;  %3675 = vmatprep.mubr.bf16.mxu1 %v4619_v18  ;;  %v2332_v59 = vshll.u32 %v713_v38, 16  ;;  %v2550_v44 = vrot.slane %v713_v38, 1  ;;  %v1900_v58 = vrot.slane %v4625_v23, 1 }
  0x61   : > { %3689 = vmatprep.subr.bf16.mxu1 %v4129_v63  ;;  %3811 = vmatprep.subr.bf16.mxu0 %v4124_v6  ;;  %v4732_v45 = vsel %vm4394_vm3, 0, %v670_v41 }
  0x62   : > { %3796 = vmatmul.mubr.bf16.gmra.mrb[4].mxu0 %v4702_v13  ;;  %v2325_v40 = vshrl.u32 %v4732_v45, 16  ;;  %v2327_v48 = vshll.u32 %v4732_v45, 16  ;;  %v2549_v49 = vrot.slane %v4732_v45, 1  ;;  %v2334_v53 = vrot.slane %v2332_v59, 1 }
  0x63   : > { %3812 = vmatpush3.bf16.msra.mxu0 %v4124_v6  ;;  %3799 = vmatprep.mubr.bf16.mxu0 %v4709_v22  ;;  %v4768_v16 = vsel %vm1222_vm5, %v1900_v58, %v1901_v61  ;;  %v4141_v6 = vld [vmem:[%s4985_s5 + $0xd8] sm:$0xff]  }
  0x64   : > { %3690 = vmatpush3.bf16.msra.mxu1 %v4129_v63  ;;  %3813 = vmatprep.subr.bf16.mxu0 %v4126_v1  ;;  %v2329_v54 = vrot.slane %v2327_v48, 1  ;;  %v4750_v55 = vsel %vm1222_vm5, %v2549_v49, %v2550_v44  ;;  %v4137_v63 = vld [vmem:[%s4985_s5 + $0xc8] sm:$0xff]  }
  0x65   : > { %3691 = vmatprep.subr.bf16.mxu1 %v4131_v36 }
  0x66   : > { %v2330_v3 = vor.u32 %v2329_v54, %v2325_v40 }
  0x67   : > { %3676 = vmatmul.mubr.bf16.gmra.mrb[12].mxu1 %v4631_v26  ;;  %3814 = vmatpush3.bf16.msra.mxu0 %v4126_v1  ;;  %v4144_v1 = vld [vmem:[%s4985_s5 + $0x1e0] sm:$0xff]  }
  0x68   : > { %3692 = vmatpush3.bf16.msra.mxu1 %v4131_v36  ;;  %3695 = vmatprep.mubr.bf16.mxu1 %v1225_v33  ;;  %v4764_v5 = vsel %vm891_vm4, %v2330_v3, %v2334_v53  ;;  %v4146_v36 = vld [vmem:[%s4985_s5 + $0x1e8] sm:$0xff]  }
  0x69   : > { %3693 = vmatprep.subr.bf16.mxu1 %v4133_v31  ;;  %3815 = vmatprep.subr.bf16.mxu0 %v4128_v34 }
  0x6a   : > { %3800 = vmatmul.mubr.bf16.gmra.mrb[8].mxu0 %v4735_v46 }
  0x6b   : > { %3816 = vmatpush3.bf16.msra.mxu0 %v4128_v34  ;;  %3803 = vmatprep.mubr.bf16.mxu0 %v4744_v10 }
  0x6c   : > { %3694 = vmatpush3.bf16.msra.mxu1 %v4133_v31  ;;  %3817 = vmatprep.subr.bf16.mxu0 %v4130_v24 }
  0x6d   : > { %3711 = vmatprep.subr.bf16.mxu1 %v4135_v50 }
  0x6f   : > { %3696 = vmatmul.mubr.bf16.vlgmr.msra.gmra.mrb[0].mxu1 %v4648_v21  ;;  %3818 = vmatpush3.bf16.msra.mxu0 %v4130_v24  ;;  %v4139_v21 = vld [vmem:[%s4985_s5 + $0xd0] sm:$0xff]  }
  0x70   : > { %3712 = vmatpush3.bf16.msra.mxu1 %v4135_v50  ;;  %3699 = vmatprep.mubr.bf16.mxu1 %v4671_v52 }
  0x71   : > { %3713 = vmatprep.subr.bf16.mxu1 %v4137_v63  ;;  %3819 = vmatprep.subr.bf16.mxu0 %v4132_v4 }
  0x72   : > { %3804 = vmatmul.mubr.bf16.gmra.mrb[12].mxu0 %v4768_v16 }
  0x73   : > { %3820 = vmatpush3.bf16.msra.mxu0 %v4132_v4  ;;  %3823 = vmatprep.mubr.bf16.mxu0 %v4421_v29 }
  0x74   : > { %3714 = vmatpush3.bf16.msra.mxu1 %v4137_v63  ;;  %3821 = vmatprep.subr.bf16.mxu0 %v4134_v12 }
  0x75   : > { %3715 = vmatprep.subr.bf16.mxu1 %v4139_v21 }
  0x77   : > { %3700 = vmatmul.mubr.bf16.gmra.mrb[4].mxu1 %v4679_v57  ;;  %3822 = vmatpush3.bf16.msra.mxu0 %v4134_v12 }
  0x78   : > { %3716 = vmatpush3.bf16.msra.mxu1 %v4139_v21  ;;  %3703 = vmatprep.mubr.bf16.mxu1 %v4702_v13 }
  0x79   : > { %3717 = vmatprep.subr.bf16.mxu1 %v4141_v6  ;;  %3839 = vmatprep.subr.bf16.mxu0 %v4136_v7 }
  0x7a   : > { %3824 = vmatmul.mubr.bf16.vlgmr.msra.gmra.mrb[0].mxu0 %v4461_v60 }
  0x7b   : > { %3840 = vmatpush3.bf16.msra.mxu0 %v4136_v7  ;;  %3827 = vmatprep.mubr.bf16.mxu0 %v4506_v42 }
  0x7c   : > { %3718 = vmatpush3.bf16.msra.mxu1 %v4141_v6  ;;  %3841 = vmatprep.subr.bf16.mxu0 %v4138_v8 }
  0x7d   : > { %3719 = vmatprep.subr.bf16.mxu1 %v4143_v19 }
  0x7f   : > { %3704 = vmatmul.mubr.bf16.gmra.mrb[8].mxu1 %v4709_v22  ;;  %3842 = vmatpush3.bf16.msra.mxu0 %v4138_v8 }
  0x80   : > { %3720 = vmatpush3.bf16.msra.mxu1 %v4143_v19  ;;  %3707 = vmatprep.mubr.bf16.mxu1 %v4735_v46 }
  0x81   : > { %3721 = vmatprep.subr.bf16.mxu1 %v4145_v15  ;;  %3843 = vmatprep.subr.bf16.mxu0 %v4140_v32 }
  0x82   : > { %3828 = vmatmul.mubr.bf16.gmra.mrb[4].mxu0 %v4537_v11 }
  0x83   : > { %3844 = vmatpush3.bf16.msra.mxu0 %v4140_v32  ;;  %3831 = vmatprep.mubr.bf16.mxu0 %v4577_v47 }
  0x84   : > { %3722 = vmatpush3.bf16.msra.mxu1 %v4145_v15  ;;  %3845 = vmatprep.subr.bf16.mxu0 %v4142_v9 }
  0x85   : > { %3723 = vmatprep.subr.bf16.mxu1 %v4147_v14 }
  0x87   : > { %3708 = vmatmul.mubr.bf16.gmra.mrb[12].mxu1 %v4744_v10  ;;  %3846 = vmatpush3.bf16.msra.mxu0 %v4142_v9 }
  0x88   : > { %3724 = vmatpush3.bf16.msra.mxu1 %v4147_v14  ;;  %3727 = vmatprep.mubr.bf16.mxu1 %v4417_v28  ;;  %v4152_v28 = vld [vmem:[%s4985_s5 + $0x208] sm:$0xff]  }
  0x89   : > { %3725 = vmatprep.subr.bf16.mxu1 %v4149_v20  ;;  %3847 = vmatprep.subr.bf16.mxu0 %v4144_v1 }
  0x8a   : > { %3832 = vmatmul.mubr.bf16.gmra.mrb[8].mxu0 %v4598_v56 }
  0x8b   : > { %3848 = vmatpush3.bf16.msra.mxu0 %v4144_v1  ;;  %3835 = vmatprep.mubr.bf16.mxu0 %v4625_v23 }
  0x8c   : > { %3726 = vmatpush3.bf16.msra.mxu1 %v4149_v20  ;;  %3849 = vmatprep.subr.bf16.mxu0 %v4146_v36 }
  0x8d   : > { %3903 = vmatprep.subr.bf16.mxu1 %v4151_v25 }
  0x8f   : > { %3728 = vmatmul.mubr.bf16.vlgmr.msra.gmra.mrb[0].mxu1 %v4421_v29  ;;  %3850 = vmatpush3.bf16.msra.mxu0 %v4146_v36  ;;  %v4154_v29 = vld [vmem:[%s4985_s5 + $0x218] sm:$0xff]  }
  0x90   : > { %3911 = vmatpush3.bf16.msra.mxu1 %v4151_v25  ;;  %3731 = vmatprep.mubr.bf16.mxu1 %v4461_v60  ;;  %v4155_v60 = vld [vmem:[%s4985_s5 + $0x220] sm:$0xff]  }
  0x91   : > { %3904 = vmatprep.subr.bf16.mxu1 %v4152_v28  ;;  %3851 = vmatprep.subr.bf16.mxu0 %v4148_v2 }
  0x92   : > { %3836 = vmatmul.mubr.bf16.gmra.mrb[12].mxu0 %v4732_v45 }
  0x93   : > { %3852 = vmatpush3.bf16.msra.mxu0 %v4148_v2  ;;  %3855 = vmatprep.mubr.bf16.mxu0 %v4467_v0  ;;  %v4156_v0 = vld [vmem:[%s4985_s5 + $0x228] sm:$0xff]  }
  0x94   : > { %3912 = vmatpush3.bf16.msra.mxu1 %v4152_v28  ;;  %3853 = vmatprep.subr.bf16.mxu0 %v4150_v27 }
  0x95   : > { %3905 = vmatprep.subr.bf16.mxu1 %v4153_v62 }
  0x97   : > { %3732 = vmatmul.mubr.bf16.gmra.mrb[4].mxu1 %v4506_v42  ;;  %3854 = vmatpush3.bf16.msra.mxu0 %v4150_v27  ;;  %v4158_v42 = vld [vmem:[%s4985_s5 + $0x238] sm:$0xff]  }
  0x98   : > { %3913 = vmatpush3.bf16.msra.mxu1 %v4153_v62  ;;  %3735 = vmatprep.mubr.bf16.mxu1 %v4537_v11 }
  0x99   : > { %3906 = vmatprep.subr.bf16.mxu1 %v4154_v29  ;;  %3871 = vmatprep.subr.bf16.mxu0 %v4151_v25 }
  0x9a   : > { %3856 = vmatmul.mubr.bf16.vlgmr.msra.gmra.mrb[0].mxu0 %v4495_v35  ;;  %v4157_v35 = vld [vmem:[%s4985_s5 + $0x230] sm:$0xff]  }
  0x9b   : > { %3872 = vmatpush3.bf16.msra.mxu0 %v4151_v25  ;;  %3859 = vmatprep.mubr.bf16.mxu0 %v4548_v17 }
  0x9c   : > { %3914 = vmatpush3.bf16.msra.mxu1 %v4154_v29  ;;  %3873 = vmatprep.subr.bf16.mxu0 %v4152_v28 }
  0x9d   : > { %3907 = vmatprep.subr.bf16.mxu1 %v4155_v60 }
  0x9f   : > { %3736 = vmatmul.mubr.bf16.gmra.mrb[8].mxu1 %v4577_v47  ;;  %3874 = vmatpush3.bf16.msra.mxu0 %v4152_v28 }
  0xa0   : > { %3915 = vmatpush3.bf16.msra.mxu1 %v4155_v60  ;;  %3739 = vmatprep.mubr.bf16.mxu1 %v4598_v56 }
  0xa1   : > { %3908 = vmatprep.subr.bf16.mxu1 %v4156_v0  ;;  %3875 = vmatprep.subr.bf16.mxu0 %v4153_v62 }
  0xa2   : > { %3860 = vmatmul.mubr.bf16.gmra.mrb[4].mxu0 %v4590_v51 }
  0xa3   : > { %3876 = vmatpush3.bf16.msra.mxu0 %v4153_v62  ;;  %3863 = vmatprep.mubr.bf16.mxu0 %v4619_v18 }
  0xa4   : > { %3916 = vmatpush3.bf16.msra.mxu1 %v4156_v0  ;;  %3877 = vmatprep.subr.bf16.mxu0 %v4154_v29 }
  0xa5   : > { %3909 = vmatprep.subr.bf16.mxu1 %v4157_v35 }
  0xa7   : > { %3740 = vmatmul.mubr.bf16.gmra.mrb[12].mxu1 %v4625_v23  ;;  %3878 = vmatpush3.bf16.msra.mxu0 %v4154_v29 }
  0xa8   : > { %3917 = vmatpush3.bf16.msra.mxu1 %v4157_v35  ;;  %3895 = vmatprep.mubr.bf16.mxu1 %v4735_v46 }
  0xa9   : > { %3910 = vmatprep.subr.bf16.mxu1 %v4158_v42  ;;  %3879 = vmatprep.subr.bf16.mxu0 %v4155_v60 }
  0xaa   : > { %3864 = vmatmul.mubr.bf16.gmra.mrb[8].mxu0 %v4631_v26 }
  0xab   : > { %3880 = vmatpush3.bf16.msra.mxu0 %v4155_v60  ;;  %3867 = vmatprep.mubr.bf16.mxu0 %v4651_v43 }
  0xac   : > { %3918 = vmatpush3.bf16.msra.mxu1 %v4158_v42  ;;  %3881 = vmatprep.subr.bf16.mxu0 %v4156_v0 }
  0xaf   : > { %3896 = vmatmul.mubr.bf16.vlgmr.msra.gmra.mrb[16].mxu1 %v4744_v10  ;;  %3882 = vmatpush3.bf16.msra.mxu0 %v4156_v0 }
  0xb0   : > { %3899 = vmatprep.mubr.bf16.mxu1 %v4768_v16  ;;  %3883 = vmatprep.subr.bf16.mxu0 %v4157_v35 }
  0xb2   : > { %3868 = vmatmul.mubr.bf16.gmra.mrb[12].mxu0 %v4764_v5 }
  0xb3   : > { %3884 = vmatpush3.bf16.msra.mxu0 %v4157_v35  ;;  %3887 = vmatprep.mubr.bf16.mxu0 %v4671_v52 }
  0xb4   : > { %3885 = vmatprep.subr.bf16.mxu0 %v4158_v42 }
  0xb7   : > { %3900 = vmatmul.mubr.bf16.gmra.mrb[20].mxu1 %v4750_v55  ;;  %3886 = vmatpush3.bf16.msra.mxu0 %v4158_v42 }
  0xba   : > { %3888 = vmatmul.mubr.bf16.vlgmr.msra.gmra.mrb[0].mxu0 %v4679_v57 }
  0xbb   : > { %3891 = vmatprep.mubr.bf16.mxu0 %v4702_v13 }
  0xc2   : > { %3892 = vmatmul.mubr.bf16.gmra.mrb[4].mxu0 %v4709_v22 }
 0x162   : > { %v3729_v11 = vpop.f32.mrb[0].mxu1 }
 0x163   : > { %v1564_v17 = vpop.f32.mrb[1].mxu1 }
 0x164   : > { %v4877_v47 = vpop.f32.mrb[2].mxu1 }
 0x165   : > { %v4879_v51 = vpop.f32.mrb[3].mxu1 }
 0x16a   : > { %v4881_v56 = vpop.f32.mrb[4].mxu1 }
 0x16b   : > { %v4883_v18 = vpop.f32.mrb[5].mxu1 }
 0x16c   : > { %v4885_v23 = vpop.f32.mrb[6].mxu1 }
 0x16d   : > { %v4887_v26 = vpop.f32.mrb[7].mxu1 }
 0x172   : > { %v3737_v43 = vpop.f32.mrb[8].mxu1 }
 0x173   : > { %v1596_v52 = vpop.f32.mrb[9].mxu1 }
 0x174   : > { %v3738_v57 = vpop.f32.mrb[10].mxu1 }
 0x175   : > { %v1599_v13 = vpop.f32.mrb[11].mxu1 }
 0x17a   : > { %v3741_v22 = vpop.f32.mrb[12].mxu1 }
 0x17b   : > { %v1612_v30 = vpop.f32.mrb[13].mxu1 }
 0x17c   : > { %v3742_v31 = vpop.f32.mrb[14].mxu1 }
 0x17d   : > { %v1615_v33 = vpop.f32.mrb[15].mxu1  ;;  %v3865_v34 = vpop.f32.mrb[8].mxu0 }
 0x17e   : > { %v3927_v37 = vadd.f32 %v3865_v34, %v3737_v43  ;;  %v2468_v39 = vpop.f32.mrb[9].mxu0 }
 0x17f   : > { %v3929_v41 = vadd.f32 %v2468_v39, %v1596_v52  ;;  %v3866_v38 = vpop.f32.mrb[10].mxu0 }
 0x180   : > { %v3931_v59 = vadd.f32 %v3866_v38, %v3738_v57  ;;  %v2471_v44 = vpop.f32.mrb[11].mxu0 }
 0x181   : > { %v3933_v46 = vadd.f32 %v2471_v44, %v1599_v13 }
 0x182   : > { %v3897_v45 = vpop.f32.mrb[16].mxu1 }
 0x183   : > { %v4891_v40 = vadd.f32 %v3927_v37, %v3897_v45  ;;  %v2684_v48 = vpop.f32.mrb[17].mxu1 }
 0x184   : > { %v4893_v49 = vadd.f32 %v3929_v41, %v2684_v48  ;;  %v3898_v24 = vpop.f32.mrb[18].mxu1 }
 0x185   : > { %v4895_v10 = vadd.f32 %v3931_v59, %v3898_v24  ;;  %v2687_v50 = vpop.f32.mrb[19].mxu1  ;;  %v3869_v53 = vpop.f32.mrb[12].mxu0 }
 0x186   : > { %v4902_v54 = vadd.f32 %v3933_v46, %v2687_v50  ;;  %v3935_v58 = vadd.f32 %v3869_v53, %v3741_v22  ;;  %v2484_v61 = vpop.f32.mrb[13].mxu0 }
 0x187   : > { %v3445_v55 = vpack.c.bf16 %v4895_v10, %v4891_v40  ;;  %v3937_v3 = vadd.f32 %v2484_v61, %v1612_v30  ;;  %v3870_v4 = vpop.f32.mrb[14].mxu0 }
 0x188   : > { %v3440_v63 = vpack.c.bf16 %v4902_v54, %v4893_v49  ;;  %v3939_v5 = vadd.f32 %v3870_v4, %v3742_v31  ;;  %v2487_v16 = vpop.f32.mrb[15].mxu0 }
 0x189   : > { %3468 = vst [vmem:[%s4900_s22 + $0x28] sm:$0xff] %v3445_v55   ;;  %v3941_v21 = vadd.f32 %v2487_v16, %v1615_v33 }
 0x18a   : > { %3467 = vst [vmem:[%s4900_s22 + $0x20] sm:$0xff] %v3440_v63   ;;  %v3901_v12 = vpop.f32.mrb[20].mxu1 }
 0x18b   : > { %v4910_v6 = vadd.f32 %v3935_v58, %v3901_v12  ;;  %v2700_v7 = vpop.f32.mrb[21].mxu1 }
 0x18c   : > { %v4912_v8 = vadd.f32 %v3937_v3, %v2700_v7  ;;  %v3902_v19 = vpop.f32.mrb[22].mxu1 }
 0x18d   : > { %v4914_v15 = vadd.f32 %v3939_v5, %v3902_v19  ;;  %v2703_v32 = vpop.f32.mrb[23].mxu1  ;;  %v3889_v14 = vpop.f32.mrb[0].mxu0  ;;  %v2890_v5 = vmul.f32 %v4891_v40, %v4891_v40 }
 0x18e   : > { %v4916_v9 = vadd.f32 %v3941_v21, %v2703_v32  ;;  %v3919_v1 = vadd.f32 %v3889_v14, %v3729_v11  ;;  %v2652_v36 = vpop.f32.mrb[1].mxu0  ;;  %v2891_v21 = vmul.f32 %v4895_v10, %v4895_v10  ;;  %v2892_v19 = vmul.f32 %v4912_v8, %v4912_v8 }
 0x18f   : > { %v3455_v20 = vpack.c.bf16 %v4914_v15, %v4910_v6  ;;  %v3920_v28 = vadd.f32 %v2652_v36, %v1564_v17  ;;  %v3890_v2 = vpop.f32.mrb[2].mxu0 }
 0x190   : > { %v3450_v25 = vpack.c.bf16 %v4916_v9, %v4912_v8  ;;  %v3921_v27 = vadd.f32 %v3890_v2, %v4877_v47  ;;  %v2655_v62 = vpop.f32.mrb[3].mxu0  ;;  %v2882_v11 = vmul.f32 %v3919_v1, %v3919_v1 }
 0x191   : > { %3470 = vst [vmem:[%s4900_s22 + $0x38] sm:$0xff] %v3455_v20   ;;  %v3922_v29 = vadd.f32 %v2655_v62, %v4879_v51  ;;  %v2880_v0 = vmul.f32 %v3920_v28, %v3920_v28 }
 0x192   : > { %3469 = vst [vmem:[%s4900_s22 + $0x30] sm:$0xff] %v3450_v25   ;;  %v3425_v60 = vpack.c.bf16 %v3921_v27, %v3919_v1  ;;  %v2883_v30 = vmul.f32 %v3921_v27, %v3921_v27  ;;  %v2895_v25 = vmul.f32 %v4914_v15, %v4914_v15 }
 0x193   : > { %v3420_v35 = vpack.c.bf16 %v3922_v29, %v3920_v28  ;;  %v2859_v42 = vadd.f32 %v3922_v29, %v3920_v28  ;;  %v2881_v43 = vmul.f32 %v3922_v29, %v3922_v29 }
 0x194   : > { %3464 = vst [vmem:[%s4900_s22 + $0x8] sm:$0xff] %v3425_v60  }
 0x195   : > { %3421 = vst [vmem:[%s4900_s22] sm:$0xff] %v3420_v35   ;;  %v2860_v52 = vadd.f32 %v3919_v1, %v2859_v42  ;;  %v2896_v57 = vadd.f32 %v2881_v43, %v2880_v0  ;;  %v3893_v13 = vpop.f32.mrb[4].mxu0  ;;  %v2894_v1 = vmul.f32 %v4910_v6, %v4910_v6 }
 0x196   : > { %v3923_v17 = vadd.f32 %v3893_v13, %v4881_v56  ;;  %v2668_v22 = vpop.f32.mrb[5].mxu0 }
 0x197   : > { %v2897_v47 = vadd.f32 %v2896_v57, %v2882_v11  ;;  %v3924_v31 = vadd.f32 %v2668_v22, %v4883_v18  ;;  %v2861_v51 = vadd.f32 %v3921_v27, %v2860_v52  ;;  %v3894_v33 = vpop.f32.mrb[6].mxu0 }
 0x198   : > { %v3925_v34 = vadd.f32 %v3894_v33, %v4885_v23  ;;  %v2671_v37 = vpop.f32.mrb[7].mxu0  ;;  %v2886_v24 = vmul.f32 %v3923_v17, %v3923_v17  ;;  %v2888_v23 = vmul.f32 %v4893_v49, %v4893_v49 }
 0x199   : > { %v2862_v39 = vadd.f32 %v3924_v31, %v2861_v51  ;;  %v2884_v41 = vmul.f32 %v3924_v31, %v3924_v31  ;;  %v2898_v38 = vadd.f32 %v2897_v47, %v2883_v30  ;;  %v3926_v59 = vadd.f32 %v2671_v37, %v4887_v26 }
 0x19a   : > { %v3435_v44 = vpack.c.bf16 %v3925_v34, %v3923_v17  ;;  %v2887_v53 = vmul.f32 %v3925_v34, %v3925_v34  ;;  %v2889_v26 = vmul.f32 %v4902_v54, %v4902_v54 }
 0x19b   : > { %v2899_v45 = vadd.f32 %v2898_v38, %v2884_v41  ;;  %v3430_v56 = vpack.c.bf16 %v3926_v59, %v3924_v31  ;;  %v2863_v46 = vadd.f32 %v3926_v59, %v2862_v39  ;;  %v2885_v48 = vmul.f32 %v3926_v59, %v3926_v59 }
 0x19c   : > { %3466 = vst [vmem:[%s4900_s22 + $0x18] sm:$0xff] %v3435_v44  }
 0x19d   : > { %3465 = vst [vmem:[%s4900_s22 + $0x10] sm:$0xff] %v3430_v56   ;;  %v2864_v18 = vadd.f32 %v3923_v17, %v2863_v46  ;;  %v2900_v50 = vadd.f32 %v2899_v45, %v2885_v48 }
 0x19f   : > { %v2865_v55 = vadd.f32 %v3925_v34, %v2864_v18  ;;  %v2901_v58 = vadd.f32 %v2900_v50, %v2886_v24 }
 0x1a1   : > { %v2866_v61 = vadd.f32 %v4893_v49, %v2865_v55  ;;  %v2902_v63 = vadd.f32 %v2901_v58, %v2887_v53 }
 0x1a3   : > { %v2903_v3 = vadd.f32 %v2902_v63, %v2888_v23  ;;  %v2867_v4 = vadd.f32 %v4902_v54, %v2866_v61 }
 0x1a5   : > { %v2868_v16 = vadd.f32 %v4891_v40, %v2867_v4  ;;  %v2904_v12 = vadd.f32 %v2903_v3, %v2889_v26  ;;  %v2893_v40 = vmul.f32 %v4916_v9, %v4916_v9 }
 0x1a7   : > { %v2869_v7 = vadd.f32 %v4895_v10, %v2868_v16  ;;  %v2905_v49 = vadd.f32 %v2904_v12, %v2890_v5 }
 0x1a9   : > { %v2870_v32 = vadd.f32 %v4912_v8, %v2869_v7  ;;  %v2906_v54 = vadd.f32 %v2905_v49, %v2891_v21 }
 0x1ab   : > { %v2871_v14 = vadd.f32 %v4916_v9, %v2870_v32  ;;  %v2907_v20 = vadd.f32 %v2906_v54, %v2892_v19 }
 0x1ad   : > { %v2872_v10 = vadd.f32 %v4910_v6, %v2871_v14  ;;  %v2908_v36 = vadd.f32 %v2907_v20, %v2893_v40 }
 0x1af   : > { %v2873_v8 = vadd.f32 %v4914_v15, %v2872_v10  ;;  %v2909_v28 = vadd.f32 %v2908_v36, %v2894_v1 }
 0x1b1   : > { %v2874_v2 = vrot.slane %v2873_v8, 4  ;;  %v2910_v27 = vadd.f32 %v2909_v28, %v2895_v25 }
 0x1b3   : > { %v2875_v62 = vadd.f32 %v2874_v2, %v2873_v8  ;;  %v2911_v29 = vrot.slane %v2910_v27, 4 }
 0x1b5   : > { %v2876_v9 = vrot.slane %v2875_v62, 2  ;;  %v2912_v60 = vadd.f32 %v2911_v29, %v2910_v27 }
 0x1b7   : > { %v2877_v0 = vadd.f32 %v2876_v9, %v2875_v62  ;;  %v2913_v35 = vrot.slane %v2912_v60, 2 }
 0x1b9   : > { %v2878_v6 = vrot.slane %v2877_v0, 1  ;;  %v2914_v42 = vadd.f32 %v2913_v35, %v2912_v60 }
 0x1bb   : > { %v2915_v43 = vrot.slane %v2914_v42, 1  ;;  %v2879_v15 = vadd.f32 %v2878_v6, %v2877_v0 }
 0x1bd   : > { %v2916_v11 = vadd.f32 %v2915_v43, %v2914_v42 }
 0x1bf   : > { %v2918_v52 = vsel %vm691_vm2, %v2879_v15, %v2916_v11 }
 0x1c0   : > { %2919 = vst [vmem:[%s465_s21] sm:$0x3] %v2918_v52 }
 0x1c1 PF: > { %s18_s28 = sadd.s32 1, %s4197_s28   ;;  %s4993_s24 = smov %s4189_s26 }
 0x1c2   : > { %p15_p0 = scmp.ge.s32.totalorder %s18_s28, 6   ;;  %s4994_s25 = smov %s4193_s27 }
 0x1c3   : > { %s4995_s26 = smov %s4998_s29  ;;  %s4996_s27 = smov %s5002_s30 }
 0x1c4   :  { %17 = sbr.rel (!%p15_p0) target bundleno = 3 (0x3), region = 100 }

</bundles_post_ra>
